<compile_context>
chip_gen: v7x
topology: tpu7x:2x2x1
jax: 0.10.0
libtpu: 0.0.40
codegen_flags: <defaults>
</compile_context>

<pallas_src>
from functools import partial

import jax
import jax.numpy as jnp
from jax.experimental import pallas as pl
from jax.experimental.pallas import tpu as pltpu


def _sigmoid_1eup(v):
    """sigmoid(x) == 0.5*tanh(0.5*x) + 0.5 : a single EUP transcendental."""
    return 0.5 * jnp.tanh(0.5 * v) + 0.5


def lstm_fc_kernel(x_ref, wih_ref, whh_ref, fc_ref, out_ref, *, T, B, H, F):
    """x_ref: [T*B, F] f32 (time-major, flattened);
    wih_ref: [F+1, 4H] f32 (rows 0..F-1 = W_ih^T, row F = b_ih + b_hh);
    whh_ref: [H, 4H] bf16 (W_hh^T);
    fc_ref:  [2, H] f32 (row 0 = w_fc, row 1 = b_fc broadcast);
    out_ref: [B, O] f32."""
    TB = T * B
    G = 4 * H

    x = x_ref[...]                                   # [T*B, F]
    wih = wih_ref[...]                               # [F+1, 4H]
    whh = whh_ref[...]                               # [H, 4H] bf16, loop-invariant

    # --- hoisted input projection on the VPU (F == 2) ------------------------
    # bias row broadcast once, then F broadcast-mul/adds; no K=2 MXU pass.
    xproj = jnp.broadcast_to(wih[F:F + 1, :], (TB, G))      # fused bias
    for f in range(F):
        xproj = xproj + x[:, f:f + 1] * wih[f:f + 1, :]     # [T*B, 4H]

    # h, c live in vregs (B=8, H=128 f32 -> exactly one vreg each).
    h = jnp.zeros((B, H), jnp.float32)
    c = jnp.zeros((B, H), jnp.float32)

    # --- recurrence, fully unrolled (T is a static compile-time constant) ----
    for t in range(T):
        gates = xproj[t * B:(t + 1) * B, :] + jnp.dot(
            h.astype(jnp.bfloat16), whh,
            preferred_element_type=jnp.float32)              # [B, 4H]
        i_g = _sigmoid_1eup(gates[:, 0 * H:1 * H])
        f_g = _sigmoid_1eup(gates[:, 1 * H:2 * H])
        g_g = jnp.tanh(gates[:, 2 * H:3 * H])
        o_g = _sigmoid_1eup(gates[:, 3 * H:4 * H])
        c = f_g * c + i_g * g_g
        h = o_g * jnp.tanh(c)

    # --- final Linear (H -> 1) as a lane reduction (no N=1 MXU pass) --------
    out_ref[...] = (
        jnp.sum(h * fc_ref[0:1, :], axis=-1, keepdims=True) + fc_ref[1:2, 0:1]
    )


def lstm_model_forward(x, params):
    """x: [B, T, F] float32 (batch_first, like the PyTorch module)."""
    B, T, F = x.shape
    w_ih = params["w_ih"]          # [4H, F]  (PyTorch nn.LSTM layout)
    w_hh = params["w_hh"]          # [4H, H]
    b_ih = params["b_ih"]          # [4H]
    b_hh = params["b_hh"]          # [4H]
    w_fc = params["w_fc"]          # [O, H]   (PyTorch nn.Linear layout)
    b_fc = params["b_fc"]          # [O]
    H = w_hh.shape[1]
    O = w_fc.shape[0]
    assert O == 1, "module spec has output_size=1 (fc implemented as lane reduction)"

    # Layout plumbing (cheap, outside the kernel):
    x_tm = jnp.transpose(x, (1, 0, 2)).reshape(T * B, F)        # [T*B, F]
    wih_b = jnp.concatenate(
        [jnp.transpose(w_ih, (1, 0)),
         (b_ih + b_hh).reshape(1, 4 * H)], axis=0)              # [F+1, 4H] f32
    whh_t = jnp.transpose(w_hh, (1, 0)).astype(jnp.bfloat16)    # [H, 4H] bf16
    fc_packed = jnp.concatenate(
        [w_fc.reshape(1, H).astype(jnp.float32),
         jnp.broadcast_to(b_fc.reshape(1, O).astype(jnp.float32), (1, H))],
        axis=0)                                                 # [2, H] f32

    vmem = pl.BlockSpec(memory_space=pltpu.MemorySpace.VMEM)
    out = pl.pallas_call(
        partial(lstm_fc_kernel, T=T, B=B, H=H, F=F),
        out_shape=jax.ShapeDtypeStruct((B, O), jnp.float32),
        in_specs=[vmem] * 4,
        out_specs=vmem,
    )(x_tm, wih_b, whh_t, fc_packed)
    return out


def init_params(key, input_size=2, hidden_size=128, output_size=1):
    """Deterministic parameter init (same layout as nn.LSTM / nn.Linear)."""
    k = jax.random.split(key, 6)
    s = 1.0 / jnp.sqrt(hidden_size)
    return {
        "w_ih": jax.random.uniform(k[0], (4 * hidden_size, input_size),
                                   jnp.float32, -s, s),
        "w_hh": jax.random.uniform(k[1], (4 * hidden_size, hidden_size),
                                   jnp.float32, -s, s),
        "b_ih": jax.random.uniform(k[2], (4 * hidden_size,), jnp.float32, -s, s),
        "b_hh": jax.random.uniform(k[3], (4 * hidden_size,), jnp.float32, -s, s),
        "w_fc": jax.random.uniform(k[4], (output_size, hidden_size),
                                   jnp.float32, -s, s),
        "b_fc": jax.random.uniform(k[5], (output_size,), jnp.float32, -s, s),
    }


def _reference_forward(x, params):
    """Pure-JAX f32 reference of the PyTorch forward (for a sanity check)."""
    B, T, F = x.shape
    H = params["w_hh"].shape[1]
    h = jnp.zeros((B, H), jnp.float32)
    c = jnp.zeros((B, H), jnp.float32)
    wih_t = params["w_ih"].T
    whh_t = params["w_hh"].T
    b = params["b_ih"] + params["b_hh"]
    for t in range(T):
        gates = x[:, t, :] @ wih_t + h @ whh_t + b
        i = jax.nn.sigmoid(gates[:, 0 * H:1 * H])
        f = jax.nn.sigmoid(gates[:, 1 * H:2 * H])
        g = jnp.tanh(gates[:, 2 * H:3 * H])
        o = jax.nn.sigmoid(gates[:, 3 * H:4 * H])
        c = f * c + i * g
        h = o * jnp.tanh(c)
    return h @ params["w_fc"].T + params["b_fc"]


if __name__ == "__main__":
    B, T, F, H, O = 8, 8, 2, 128, 1
    key = jax.random.PRNGKey(0)
    kx, kp = jax.random.split(key)
    x = jax.random.normal(kx, (B, T, F), dtype=jnp.float32)
    params = init_params(kp, input_size=F, hidden_size=H, output_size=O)

    out = lstm_model_forward(x, params)
    out = jax.block_until_ready(out)
    assert out.shape == (B, O)

    ref = _reference_forward(x, params)
    # Tolerance reflects the intentional bf16 storage of W_hh in the recurrent
    # matmul (per perf review) vs. the full-f32 reference; at H=128 / T=8 the
    # observed error is O(1e-3) or less.
    assert jnp.allclose(out, ref, atol=5e-3, rtol=5e-3), "mismatch vs JAX reference"

    print("KERNEL_OK")
</pallas_src>

<mosaic_0001>
module attributes {stable_mosaic.version = 11 : i64} {
  func.func @lstm_fc_kernel(%arg0: memref<64x2xf32, #tpu.memory_space<vmem>>, %arg1: memref<3x512xf32, #tpu.memory_space<vmem>>, %arg2: memref<128x512xbf16, #tpu.memory_space<vmem>>, %arg3: memref<2x128xf32, #tpu.memory_space<vmem>>, %arg4: memref<8x1xf32, #tpu.memory_space<vmem>>) attributes {dimension_semantics = [], scalar_prefetch = 0 : i64, scratch_operands = 0 : i64, tpu.core_type = #tpu.core_type<tc>} {
    %c0 = arith.constant 0 : index
    %c0_0 = arith.constant 0 : index
    %0 = vector.load %arg0[%c0, %c0_0] : memref<64x2xf32, #tpu.memory_space<vmem>>, vector<64x2xf32>
    %c0_1 = arith.constant 0 : index
    %c0_2 = arith.constant 0 : index
    %1 = vector.load %arg1[%c0_1, %c0_2] : memref<3x512xf32, #tpu.memory_space<vmem>>, vector<3x512xf32>
    %c0_3 = arith.constant 0 : index
    %c0_4 = arith.constant 0 : index
    %2 = vector.load %arg2[%c0_3, %c0_4] : memref<128x512xbf16, #tpu.memory_space<vmem>>, vector<128x512xbf16>
    %3 = vector.extract_strided_slice %1 {offsets = [2, 0], sizes = [1, 512], strides = [1, 1]} : vector<3x512xf32> to vector<1x512xf32>
    %4 = vector.shape_cast %3 : vector<1x512xf32> to vector<1x512xf32>
    %5 = vector.broadcast %4 : vector<1x512xf32> to vector<64x512xf32>
    %6 = vector.extract_strided_slice %0 {offsets = [0, 0], sizes = [64, 1], strides = [1, 1]} : vector<64x2xf32> to vector<64x1xf32>
    %7 = vector.extract_strided_slice %1 {offsets = [0, 0], sizes = [1, 512], strides = [1, 1]} : vector<3x512xf32> to vector<1x512xf32>
    %8 = vector.broadcast %6 : vector<64x1xf32> to vector<64x512xf32>
    %9 = vector.broadcast %7 : vector<1x512xf32> to vector<64x512xf32>
    %10 = arith.mulf %8, %9 : vector<64x512xf32>
    %11 = arith.addf %5, %10 : vector<64x512xf32>
    %12 = vector.extract_strided_slice %0 {offsets = [0, 1], sizes = [64, 1], strides = [1, 1]} : vector<64x2xf32> to vector<64x1xf32>
    %13 = vector.extract_strided_slice %1 {offsets = [1, 0], sizes = [1, 512], strides = [1, 1]} : vector<3x512xf32> to vector<1x512xf32>
    %14 = vector.broadcast %12 : vector<64x1xf32> to vector<64x512xf32>
    %15 = vector.broadcast %13 : vector<1x512xf32> to vector<64x512xf32>
    %16 = arith.mulf %14, %15 : vector<64x512xf32>
    %17 = arith.addf %11, %16 : vector<64x512xf32>
    %cst = arith.constant 0.000000e+00 : f32
    %18 = vector.broadcast %cst : f32 to vector<8x128xf32>
    %cst_5 = arith.constant 0.000000e+00 : f32
    %19 = vector.broadcast %cst_5 : f32 to vector<8x128xf32>
    %20 = vector.extract_strided_slice %17 {offsets = [0, 0], sizes = [8, 512], strides = [1, 1]} : vector<64x512xf32> to vector<8x512xf32>
    %21 = arith.truncf %18 : vector<8x128xf32> to vector<8x128xbf16>
    %cst_6 = arith.constant dense<0.000000e+00> : vector<8x512xf32>
    %22 = tpu.matmul %21, %2, %cst_6 {dimension_numbers = #tpu.dot_dimension_numbers<[1], [0], [0], [1], [0, 0, 1, 1], [], []>} : vector<8x128xbf16>, vector<128x512xbf16>, vector<8x512xf32> -> vector<8x512xf32>
    %23 = arith.addf %20, %22 : vector<8x512xf32>
    %24 = vector.extract_strided_slice %23 {offsets = [0, 0], sizes = [8, 128], strides = [1, 1]} : vector<8x512xf32> to vector<8x128xf32>
    %cst_7 = arith.constant 5.000000e-01 : f32
    %25 = vector.broadcast %cst_7 : f32 to vector<8x128xf32>
    %26 = arith.mulf %25, %24 : vector<8x128xf32>
    %27 = math.tanh %26 : vector<8x128xf32>
    %cst_8 = arith.constant 5.000000e-01 : f32
    %28 = vector.broadcast %cst_8 : f32 to vector<8x128xf32>
    %29 = arith.mulf %28, %27 : vector<8x128xf32>
    %cst_9 = arith.constant 5.000000e-01 : f32
    %30 = vector.broadcast %cst_9 : f32 to vector<8x128xf32>
    %31 = arith.addf %29, %30 : vector<8x128xf32>
    %32 = vector.extract_strided_slice %23 {offsets = [0, 128], sizes = [8, 128], strides = [1, 1]} : vector<8x512xf32> to vector<8x128xf32>
    %cst_10 = arith.constant 5.000000e-01 : f32
    %33 = vector.broadcast %cst_10 : f32 to vector<8x128xf32>
    %34 = arith.mulf %33, %32 : vector<8x128xf32>
    %35 = math.tanh %34 : vector<8x128xf32>
    %cst_11 = arith.constant 5.000000e-01 : f32
    %36 = vector.broadcast %cst_11 : f32 to vector<8x128xf32>
    %37 = arith.mulf %36, %35 : vector<8x128xf32>
    %cst_12 = arith.constant 5.000000e-01 : f32
    %38 = vector.broadcast %cst_12 : f32 to vector<8x128xf32>
    %39 = arith.addf %37, %38 : vector<8x128xf32>
    %40 = vector.extract_strided_slice %23 {offsets = [0, 256], sizes = [8, 128], strides = [1, 1]} : vector<8x512xf32> to vector<8x128xf32>
    %41 = math.tanh %40 : vector<8x128xf32>
    %42 = vector.extract_strided_slice %23 {offsets = [0, 384], sizes = [8, 128], strides = [1, 1]} : vector<8x512xf32> to vector<8x128xf32>
    %cst_13 = arith.constant 5.000000e-01 : f32
    %43 = vector.broadcast %cst_13 : f32 to vector<8x128xf32>
    %44 = arith.mulf %43, %42 : vector<8x128xf32>
    %45 = math.tanh %44 : vector<8x128xf32>
    %cst_14 = arith.constant 5.000000e-01 : f32
    %46 = vector.broadcast %cst_14 : f32 to vector<8x128xf32>
    %47 = arith.mulf %46, %45 : vector<8x128xf32>
    %cst_15 = arith.constant 5.000000e-01 : f32
    %48 = vector.broadcast %cst_15 : f32 to vector<8x128xf32>
    %49 = arith.addf %47, %48 : vector<8x128xf32>
    %50 = arith.mulf %39, %19 : vector<8x128xf32>
    %51 = arith.mulf %31, %41 : vector<8x128xf32>
    %52 = arith.addf %50, %51 : vector<8x128xf32>
    %53 = math.tanh %52 : vector<8x128xf32>
    %54 = arith.mulf %49, %53 : vector<8x128xf32>
    %55 = vector.extract_strided_slice %17 {offsets = [8, 0], sizes = [8, 512], strides = [1, 1]} : vector<64x512xf32> to vector<8x512xf32>
    %56 = arith.truncf %54 : vector<8x128xf32> to vector<8x128xbf16>
    %cst_16 = arith.constant dense<0.000000e+00> : vector<8x512xf32>
    %57 = tpu.matmul %56, %2, %cst_16 {dimension_numbers = #tpu.dot_dimension_numbers<[1], [0], [0], [1], [0, 0, 1, 1], [], []>} : vector<8x128xbf16>, vector<128x512xbf16>, vector<8x512xf32> -> vector<8x512xf32>
    %58 = arith.addf %55, %57 : vector<8x512xf32>
    %59 = vector.extract_strided_slice %58 {offsets = [0, 0], sizes = [8, 128], strides = [1, 1]} : vector<8x512xf32> to vector<8x128xf32>
    %cst_17 = arith.constant 5.000000e-01 : f32
    %60 = vector.broadcast %cst_17 : f32 to vector<8x128xf32>
    %61 = arith.mulf %60, %59 : vector<8x128xf32>
    %62 = math.tanh %61 : vector<8x128xf32>
    %cst_18 = arith.constant 5.000000e-01 : f32
    %63 = vector.broadcast %cst_18 : f32 to vector<8x128xf32>
    %64 = arith.mulf %63, %62 : vector<8x128xf32>
    %cst_19 = arith.constant 5.000000e-01 : f32
    %65 = vector.broadcast %cst_19 : f32 to vector<8x128xf32>
    %66 = arith.addf %64, %65 : vector<8x128xf32>
    %67 = vector.extract_strided_slice %58 {offsets = [0, 128], sizes = [8, 128], strides = [1, 1]} : vector<8x512xf32> to vector<8x128xf32>
    %cst_20 = arith.constant 5.000000e-01 : f32
    %68 = vector.broadcast %cst_20 : f32 to vector<8x128xf32>
    %69 = arith.mulf %68, %67 : vector<8x128xf32>
    %70 = math.tanh %69 : vector<8x128xf32>
    %cst_21 = arith.constant 5.000000e-01 : f32
    %71 = vector.broadcast %cst_21 : f32 to vector<8x128xf32>
    %72 = arith.mulf %71, %70 : vector<8x128xf32>
    %cst_22 = arith.constant 5.000000e-01 : f32
    %73 = vector.broadcast %cst_22 : f32 to vector<8x128xf32>
    %74 = arith.addf %72, %73 : vector<8x128xf32>
    %75 = vector.extract_strided_slice %58 {offsets = [0, 256], sizes = [8, 128], strides = [1, 1]} : vector<8x512xf32> to vector<8x128xf32>
    %76 = math.tanh %75 : vector<8x128xf32>
    %77 = vector.extract_strided_slice %58 {offsets = [0, 384], sizes = [8, 128], strides = [1, 1]} : vector<8x512xf32> to vector<8x128xf32>
    %cst_23 = arith.constant 5.000000e-01 : f32
    %78 = vector.broadcast %cst_23 : f32 to vector<8x128xf32>
    %79 = arith.mulf %78, %77 : vector<8x128xf32>
    %80 = math.tanh %79 : vector<8x128xf32>
    %cst_24 = arith.constant 5.000000e-01 : f32
    %81 = vector.broadcast %cst_24 : f32 to vector<8x128xf32>
    %82 = arith.mulf %81, %80 : vector<8x128xf32>
    %cst_25 = arith.constant 5.000000e-01 : f32
    %83 = vector.broadcast %cst_25 : f32 to vector<8x128xf32>
    %84 = arith.addf %82, %83 : vector<8x128xf32>
    %85 = arith.mulf %74, %52 : vector<8x128xf32>
    %86 = arith.mulf %66, %76 : vector<8x128xf32>
    %87 = arith.addf %85, %86 : vector<8x128xf32>
    %88 = math.tanh %87 : vector<8x128xf32>
    %89 = arith.mulf %84, %88 : vector<8x128xf32>
    %90 = vector.extract_strided_slice %17 {offsets = [16, 0], sizes = [8, 512], strides = [1, 1]} : vector<64x512xf32> to vector<8x512xf32>
    %91 = arith.truncf %89 : vector<8x128xf32> to vector<8x128xbf16>
    %cst_26 = arith.constant dense<0.000000e+00> : vector<8x512xf32>
    %92 = tpu.matmul %91, %2, %cst_26 {dimension_numbers = #tpu.dot_dimension_numbers<[1], [0], [0], [1], [0, 0, 1, 1], [], []>} : vector<8x128xbf16>, vector<128x512xbf16>, vector<8x512xf32> -> vector<8x512xf32>
    %93 = arith.addf %90, %92 : vector<8x512xf32>
    %94 = vector.extract_strided_slice %93 {offsets = [0, 0], sizes = [8, 128], strides = [1, 1]} : vector<8x512xf32> to vector<8x128xf32>
    %cst_27 = arith.constant 5.000000e-01 : f32
    %95 = vector.broadcast %cst_27 : f32 to vector<8x128xf32>
    %96 = arith.mulf %95, %94 : vector<8x128xf32>
    %97 = math.tanh %96 : vector<8x128xf32>
    %cst_28 = arith.constant 5.000000e-01 : f32
    %98 = vector.broadcast %cst_28 : f32 to vector<8x128xf32>
    %99 = arith.mulf %98, %97 : vector<8x128xf32>
    %cst_29 = arith.constant 5.000000e-01 : f32
    %100 = vector.broadcast %cst_29 : f32 to vector<8x128xf32>
    %101 = arith.addf %99, %100 : vector<8x128xf32>
    %102 = vector.extract_strided_slice %93 {offsets = [0, 128], sizes = [8, 128], strides = [1, 1]} : vector<8x512xf32> to vector<8x128xf32>
    %cst_30 = arith.constant 5.000000e-01 : f32
    %103 = vector.broadcast %cst_30 : f32 to vector<8x128xf32>
    %104 = arith.mulf %103, %102 : vector<8x128xf32>
    %105 = math.tanh %104 : vector<8x128xf32>
    %cst_31 = arith.constant 5.000000e-01 : f32
    %106 = vector.broadcast %cst_31 : f32 to vector<8x128xf32>
    %107 = arith.mulf %106, %105 : vector<8x128xf32>
    %cst_32 = arith.constant 5.000000e-01 : f32
    %108 = vector.broadcast %cst_32 : f32 to vector<8x128xf32>
    %109 = arith.addf %107, %108 : vector<8x128xf32>
    %110 = vector.extract_strided_slice %93 {offsets = [0, 256], sizes = [8, 128], strides = [1, 1]} : vector<8x512xf32> to vector<8x128xf32>
    %111 = math.tanh %110 : vector<8x128xf32>
    %112 = vector.extract_strided_slice %93 {offsets = [0, 384], sizes = [8, 128], strides = [1, 1]} : vector<8x512xf32> to vector<8x128xf32>
    %cst_33 = arith.constant 5.000000e-01 : f32
    %113 = vector.broadcast %cst_33 : f32 to vector<8x128xf32>
    %114 = arith.mulf %113, %112 : vector<8x128xf32>
    %115 = math.tanh %114 : vector<8x128xf32>
    %cst_34 = arith.constant 5.000000e-01 : f32
    %116 = vector.broadcast %cst_34 : f32 to vector<8x128xf32>
    %117 = arith.mulf %116, %115 : vector<8x128xf32>
    %cst_35 = arith.constant 5.000000e-01 : f32
    %118 = vector.broadcast %cst_35 : f32 to vector<8x128xf32>
    %119 = arith.addf %117, %118 : vector<8x128xf32>
    %120 = arith.mulf %109, %87 : vector<8x128xf32>
    %121 = arith.mulf %101, %111 : vector<8x128xf32>
    %122 = arith.addf %120, %121 : vector<8x128xf32>
    %123 = math.tanh %122 : vector<8x128xf32>
    %124 = arith.mulf %119, %123 : vector<8x128xf32>
    %125 = vector.extract_strided_slice %17 {offsets = [24, 0], sizes = [8, 512], strides = [1, 1]} : vector<64x512xf32> to vector<8x512xf32>
    %126 = arith.truncf %124 : vector<8x128xf32> to vector<8x128xbf16>
    %cst_36 = arith.constant dense<0.000000e+00> : vector<8x512xf32>
    %127 = tpu.matmul %126, %2, %cst_36 {dimension_numbers = #tpu.dot_dimension_numbers<[1], [0], [0], [1], [0, 0, 1, 1], [], []>} : vector<8x128xbf16>, vector<128x512xbf16>, vector<8x512xf32> -> vector<8x512xf32>
    %128 = arith.addf %125, %127 : vector<8x512xf32>
    %129 = vector.extract_strided_slice %128 {offsets = [0, 0], sizes = [8, 128], strides = [1, 1]} : vector<8x512xf32> to vector<8x128xf32>
    %cst_37 = arith.constant 5.000000e-01 : f32
    %130 = vector.broadcast %cst_37 : f32 to vector<8x128xf32>
    %131 = arith.mulf %130, %129 : vector<8x128xf32>
    %132 = math.tanh %131 : vector<8x128xf32>
    %cst_38 = arith.constant 5.000000e-01 : f32
    %133 = vector.broadcast %cst_38 : f32 to vector<8x128xf32>
    %134 = arith.mulf %133, %132 : vector<8x128xf32>
    %cst_39 = arith.constant 5.000000e-01 : f32
    %135 = vector.broadcast %cst_39 : f32 to vector<8x128xf32>
    %136 = arith.addf %134, %135 : vector<8x128xf32>
    %137 = vector.extract_strided_slice %128 {offsets = [0, 128], sizes = [8, 128], strides = [1, 1]} : vector<8x512xf32> to vector<8x128xf32>
    %cst_40 = arith.constant 5.000000e-01 : f32
    %138 = vector.broadcast %cst_40 : f32 to vector<8x128xf32>
    %139 = arith.mulf %138, %137 : vector<8x128xf32>
    %140 = math.tanh %139 : vector<8x128xf32>
    %cst_41 = arith.constant 5.000000e-01 : f32
    %141 = vector.broadcast %cst_41 : f32 to vector<8x128xf32>
    %142 = arith.mulf %141, %140 : vector<8x128xf32>
    %cst_42 = arith.constant 5.000000e-01 : f32
    %143 = vector.broadcast %cst_42 : f32 to vector<8x128xf32>
    %144 = arith.addf %142, %143 : vector<8x128xf32>
    %145 = vector.extract_strided_slice %128 {offsets = [0, 256], sizes = [8, 128], strides = [1, 1]} : vector<8x512xf32> to vector<8x128xf32>
    %146 = math.tanh %145 : vector<8x128xf32>
    %147 = vector.extract_strided_slice %128 {offsets = [0, 384], sizes = [8, 128], strides = [1, 1]} : vector<8x512xf32> to vector<8x128xf32>
    %cst_43 = arith.constant 5.000000e-01 : f32
    %148 = vector.broadcast %cst_43 : f32 to vector<8x128xf32>
    %149 = arith.mulf %148, %147 : vector<8x128xf32>
    %150 = math.tanh %149 : vector<8x128xf32>
    %cst_44 = arith.constant 5.000000e-01 : f32
    %151 = vector.broadcast %cst_44 : f32 to vector<8x128xf32>
    %152 = arith.mulf %151, %150 : vector<8x128xf32>
    %cst_45 = arith.constant 5.000000e-01 : f32
    %153 = vector.broadcast %cst_45 : f32 to vector<8x128xf32>
    %154 = arith.addf %152, %153 : vector<8x128xf32>
    %155 = arith.mulf %144, %122 : vector<8x128xf32>
    %156 = arith.mulf %136, %146 : vector<8x128xf32>
    %157 = arith.addf %155, %156 : vector<8x128xf32>
    %158 = math.tanh %157 : vector<8x128xf32>
    %159 = arith.mulf %154, %158 : vector<8x128xf32>
    %160 = vector.extract_strided_slice %17 {offsets = [32, 0], sizes = [8, 512], strides = [1, 1]} : vector<64x512xf32> to vector<8x512xf32>
    %161 = arith.truncf %159 : vector<8x128xf32> to vector<8x128xbf16>
    %cst_46 = arith.constant dense<0.000000e+00> : vector<8x512xf32>
    %162 = tpu.matmul %161, %2, %cst_46 {dimension_numbers = #tpu.dot_dimension_numbers<[1], [0], [0], [1], [0, 0, 1, 1], [], []>} : vector<8x128xbf16>, vector<128x512xbf16>, vector<8x512xf32> -> vector<8x512xf32>
    %163 = arith.addf %160, %162 : vector<8x512xf32>
    %164 = vector.extract_strided_slice %163 {offsets = [0, 0], sizes = [8, 128], strides = [1, 1]} : vector<8x512xf32> to vector<8x128xf32>
    %cst_47 = arith.constant 5.000000e-01 : f32
    %165 = vector.broadcast %cst_47 : f32 to vector<8x128xf32>
    %166 = arith.mulf %165, %164 : vector<8x128xf32>
    %167 = math.tanh %166 : vector<8x128xf32>
    %cst_48 = arith.constant 5.000000e-01 : f32
    %168 = vector.broadcast %cst_48 : f32 to vector<8x128xf32>
    %169 = arith.mulf %168, %167 : vector<8x128xf32>
    %cst_49 = arith.constant 5.000000e-01 : f32
    %170 = vector.broadcast %cst_49 : f32 to vector<8x128xf32>
    %171 = arith.addf %169, %170 : vector<8x128xf32>
    %172 = vector.extract_strided_slice %163 {offsets = [0, 128], sizes = [8, 128], strides = [1, 1]} : vector<8x512xf32> to vector<8x128xf32>
    %cst_50 = arith.constant 5.000000e-01 : f32
    %173 = vector.broadcast %cst_50 : f32 to vector<8x128xf32>
    %174 = arith.mulf %173, %172 : vector<8x128xf32>
    %175 = math.tanh %174 : vector<8x128xf32>
    %cst_51 = arith.constant 5.000000e-01 : f32
    %176 = vector.broadcast %cst_51 : f32 to vector<8x128xf32>
    %177 = arith.mulf %176, %175 : vector<8x128xf32>
    %cst_52 = arith.constant 5.000000e-01 : f32
    %178 = vector.broadcast %cst_52 : f32 to vector<8x128xf32>
    %179 = arith.addf %177, %178 : vector<8x128xf32>
    %180 = vector.extract_strided_slice %163 {offsets = [0, 256], sizes = [8, 128], strides = [1, 1]} : vector<8x512xf32> to vector<8x128xf32>
    %181 = math.tanh %180 : vector<8x128xf32>
    %182 = vector.extract_strided_slice %163 {offsets = [0, 384], sizes = [8, 128], strides = [1, 1]} : vector<8x512xf32> to vector<8x128xf32>
    %cst_53 = arith.constant 5.000000e-01 : f32
    %183 = vector.broadcast %cst_53 : f32 to vector<8x128xf32>
    %184 = arith.mulf %183, %182 : vector<8x128xf32>
    %185 = math.tanh %184 : vector<8x128xf32>
    %cst_54 = arith.constant 5.000000e-01 : f32
    %186 = vector.broadcast %cst_54 : f32 to vector<8x128xf32>
    %187 = arith.mulf %186, %185 : vector<8x128xf32>
    %cst_55 = arith.constant 5.000000e-01 : f32
    %188 = vector.broadcast %cst_55 : f32 to vector<8x128xf32>
    %189 = arith.addf %187, %188 : vector<8x128xf32>
    %190 = arith.mulf %179, %157 : vector<8x128xf32>
    %191 = arith.mulf %171, %181 : vector<8x128xf32>
    %192 = arith.addf %190, %191 : vector<8x128xf32>
    %193 = math.tanh %192 : vector<8x128xf32>
    %194 = arith.mulf %189, %193 : vector<8x128xf32>
    %195 = vector.extract_strided_slice %17 {offsets = [40, 0], sizes = [8, 512], strides = [1, 1]} : vector<64x512xf32> to vector<8x512xf32>
    %196 = arith.truncf %194 : vector<8x128xf32> to vector<8x128xbf16>
    %cst_56 = arith.constant dense<0.000000e+00> : vector<8x512xf32>
    %197 = tpu.matmul %196, %2, %cst_56 {dimension_numbers = #tpu.dot_dimension_numbers<[1], [0], [0], [1], [0, 0, 1, 1], [], []>} : vector<8x128xbf16>, vector<128x512xbf16>, vector<8x512xf32> -> vector<8x512xf32>
    %198 = arith.addf %195, %197 : vector<8x512xf32>
    %199 = vector.extract_strided_slice %198 {offsets = [0, 0], sizes = [8, 128], strides = [1, 1]} : vector<8x512xf32> to vector<8x128xf32>
    %cst_57 = arith.constant 5.000000e-01 : f32
    %200 = vector.broadcast %cst_57 : f32 to vector<8x128xf32>
    %201 = arith.mulf %200, %199 : vector<8x128xf32>
    %202 = math.tanh %201 : vector<8x128xf32>
    %cst_58 = arith.constant 5.000000e-01 : f32
    %203 = vector.broadcast %cst_58 : f32 to vector<8x128xf32>
    %204 = arith.mulf %203, %202 : vector<8x128xf32>
    %cst_59 = arith.constant 5.000000e-01 : f32
    %205 = vector.broadcast %cst_59 : f32 to vector<8x128xf32>
    %206 = arith.addf %204, %205 : vector<8x128xf32>
    %207 = vector.extract_strided_slice %198 {offsets = [0, 128], sizes = [8, 128], strides = [1, 1]} : vector<8x512xf32> to vector<8x128xf32>
    %cst_60 = arith.constant 5.000000e-01 : f32
    %208 = vector.broadcast %cst_60 : f32 to vector<8x128xf32>
    %209 = arith.mulf %208, %207 : vector<8x128xf32>
    %210 = math.tanh %209 : vector<8x128xf32>
    %cst_61 = arith.constant 5.000000e-01 : f32
    %211 = vector.broadcast %cst_61 : f32 to vector<8x128xf32>
    %212 = arith.mulf %211, %210 : vector<8x128xf32>
    %cst_62 = arith.constant 5.000000e-01 : f32
    %213 = vector.broadcast %cst_62 : f32 to vector<8x128xf32>
    %214 = arith.addf %212, %213 : vector<8x128xf32>
    %215 = vector.extract_strided_slice %198 {offsets = [0, 256], sizes = [8, 128], strides = [1, 1]} : vector<8x512xf32> to vector<8x128xf32>
    %216 = math.tanh %215 : vector<8x128xf32>
    %217 = vector.extract_strided_slice %198 {offsets = [0, 384], sizes = [8, 128], strides = [1, 1]} : vector<8x512xf32> to vector<8x128xf32>
    %cst_63 = arith.constant 5.000000e-01 : f32
    %218 = vector.broadcast %cst_63 : f32 to vector<8x128xf32>
    %219 = arith.mulf %218, %217 : vector<8x128xf32>
    %220 = math.tanh %219 : vector<8x128xf32>
    %cst_64 = arith.constant 5.000000e-01 : f32
    %221 = vector.broadcast %cst_64 : f32 to vector<8x128xf32>
    %222 = arith.mulf %221, %220 : vector<8x128xf32>
    %cst_65 = arith.constant 5.000000e-01 : f32
    %223 = vector.broadcast %cst_65 : f32 to vector<8x128xf32>
    %224 = arith.addf %222, %223 : vector<8x128xf32>
    %225 = arith.mulf %214, %192 : vector<8x128xf32>
    %226 = arith.mulf %206, %216 : vector<8x128xf32>
    %227 = arith.addf %225, %226 : vector<8x128xf32>
    %228 = math.tanh %227 : vector<8x128xf32>
    %229 = arith.mulf %224, %228 : vector<8x128xf32>
    %230 = vector.extract_strided_slice %17 {offsets = [48, 0], sizes = [8, 512], strides = [1, 1]} : vector<64x512xf32> to vector<8x512xf32>
    %231 = arith.truncf %229 : vector<8x128xf32> to vector<8x128xbf16>
    %cst_66 = arith.constant dense<0.000000e+00> : vector<8x512xf32>
    %232 = tpu.matmul %231, %2, %cst_66 {dimension_numbers = #tpu.dot_dimension_numbers<[1], [0], [0], [1], [0, 0, 1, 1], [], []>} : vector<8x128xbf16>, vector<128x512xbf16>, vector<8x512xf32> -> vector<8x512xf32>
    %233 = arith.addf %230, %232 : vector<8x512xf32>
    %234 = vector.extract_strided_slice %233 {offsets = [0, 0], sizes = [8, 128], strides = [1, 1]} : vector<8x512xf32> to vector<8x128xf32>
    %cst_67 = arith.constant 5.000000e-01 : f32
    %235 = vector.broadcast %cst_67 : f32 to vector<8x128xf32>
    %236 = arith.mulf %235, %234 : vector<8x128xf32>
    %237 = math.tanh %236 : vector<8x128xf32>
    %cst_68 = arith.constant 5.000000e-01 : f32
    %238 = vector.broadcast %cst_68 : f32 to vector<8x128xf32>
    %239 = arith.mulf %238, %237 : vector<8x128xf32>
    %cst_69 = arith.constant 5.000000e-01 : f32
    %240 = vector.broadcast %cst_69 : f32 to vector<8x128xf32>
    %241 = arith.addf %239, %240 : vector<8x128xf32>
    %242 = vector.extract_strided_slice %233 {offsets = [0, 128], sizes = [8, 128], strides = [1, 1]} : vector<8x512xf32> to vector<8x128xf32>
    %cst_70 = arith.constant 5.000000e-01 : f32
    %243 = vector.broadcast %cst_70 : f32 to vector<8x128xf32>
    %244 = arith.mulf %243, %242 : vector<8x128xf32>
    %245 = math.tanh %244 : vector<8x128xf32>
    %cst_71 = arith.constant 5.000000e-01 : f32
    %246 = vector.broadcast %cst_71 : f32 to vector<8x128xf32>
    %247 = arith.mulf %246, %245 : vector<8x128xf32>
    %cst_72 = arith.constant 5.000000e-01 : f32
    %248 = vector.broadcast %cst_72 : f32 to vector<8x128xf32>
    %249 = arith.addf %247, %248 : vector<8x128xf32>
    %250 = vector.extract_strided_slice %233 {offsets = [0, 256], sizes = [8, 128], strides = [1, 1]} : vector<8x512xf32> to vector<8x128xf32>
    %251 = math.tanh %250 : vector<8x128xf32>
    %252 = vector.extract_strided_slice %233 {offsets = [0, 384], sizes = [8, 128], strides = [1, 1]} : vector<8x512xf32> to vector<8x128xf32>
    %cst_73 = arith.constant 5.000000e-01 : f32
    %253 = vector.broadcast %cst_73 : f32 to vector<8x128xf32>
    %254 = arith.mulf %253, %252 : vector<8x128xf32>
    %255 = math.tanh %254 : vector<8x128xf32>
    %cst_74 = arith.constant 5.000000e-01 : f32
    %256 = vector.broadcast %cst_74 : f32 to vector<8x128xf32>
    %257 = arith.mulf %256, %255 : vector<8x128xf32>
    %cst_75 = arith.constant 5.000000e-01 : f32
    %258 = vector.broadcast %cst_75 : f32 to vector<8x128xf32>
    %259 = arith.addf %257, %258 : vector<8x128xf32>
    %260 = arith.mulf %249, %227 : vector<8x128xf32>
    %261 = arith.mulf %241, %251 : vector<8x128xf32>
    %262 = arith.addf %260, %261 : vector<8x128xf32>
    %263 = math.tanh %262 : vector<8x128xf32>
    %264 = arith.mulf %259, %263 : vector<8x128xf32>
    %265 = vector.extract_strided_slice %17 {offsets = [56, 0], sizes = [8, 512], strides = [1, 1]} : vector<64x512xf32> to vector<8x512xf32>
    %266 = arith.truncf %264 : vector<8x128xf32> to vector<8x128xbf16>
    %cst_76 = arith.constant dense<0.000000e+00> : vector<8x512xf32>
    %267 = tpu.matmul %266, %2, %cst_76 {dimension_numbers = #tpu.dot_dimension_numbers<[1], [0], [0], [1], [0, 0, 1, 1], [], []>} : vector<8x128xbf16>, vector<128x512xbf16>, vector<8x512xf32> -> vector<8x512xf32>
    %268 = arith.addf %265, %267 : vector<8x512xf32>
    %269 = vector.extract_strided_slice %268 {offsets = [0, 0], sizes = [8, 128], strides = [1, 1]} : vector<8x512xf32> to vector<8x128xf32>
    %cst_77 = arith.constant 5.000000e-01 : f32
    %270 = vector.broadcast %cst_77 : f32 to vector<8x128xf32>
    %271 = arith.mulf %270, %269 : vector<8x128xf32>
    %272 = math.tanh %271 : vector<8x128xf32>
    %cst_78 = arith.constant 5.000000e-01 : f32
    %273 = vector.broadcast %cst_78 : f32 to vector<8x128xf32>
    %274 = arith.mulf %273, %272 : vector<8x128xf32>
    %cst_79 = arith.constant 5.000000e-01 : f32
    %275 = vector.broadcast %cst_79 : f32 to vector<8x128xf32>
    %276 = arith.addf %274, %275 : vector<8x128xf32>
    %277 = vector.extract_strided_slice %268 {offsets = [0, 128], sizes = [8, 128], strides = [1, 1]} : vector<8x512xf32> to vector<8x128xf32>
    %cst_80 = arith.constant 5.000000e-01 : f32
    %278 = vector.broadcast %cst_80 : f32 to vector<8x128xf32>
    %279 = arith.mulf %278, %277 : vector<8x128xf32>
    %280 = math.tanh %279 : vector<8x128xf32>
    %cst_81 = arith.constant 5.000000e-01 : f32
    %281 = vector.broadcast %cst_81 : f32 to vector<8x128xf32>
    %282 = arith.mulf %281, %280 : vector<8x128xf32>
    %cst_82 = arith.constant 5.000000e-01 : f32
    %283 = vector.broadcast %cst_82 : f32 to vector<8x128xf32>
    %284 = arith.addf %282, %283 : vector<8x128xf32>
    %285 = vector.extract_strided_slice %268 {offsets = [0, 256], sizes = [8, 128], strides = [1, 1]} : vector<8x512xf32> to vector<8x128xf32>
    %286 = math.tanh %285 : vector<8x128xf32>
    %287 = vector.extract_strided_slice %268 {offsets = [0, 384], sizes = [8, 128], strides = [1, 1]} : vector<8x512xf32> to vector<8x128xf32>
    %cst_83 = arith.constant 5.000000e-01 : f32
    %288 = vector.broadcast %cst_83 : f32 to vector<8x128xf32>
    %289 = arith.mulf %288, %287 : vector<8x128xf32>
    %290 = math.tanh %289 : vector<8x128xf32>
    %cst_84 = arith.constant 5.000000e-01 : f32
    %291 = vector.broadcast %cst_84 : f32 to vector<8x128xf32>
    %292 = arith.mulf %291, %290 : vector<8x128xf32>
    %cst_85 = arith.constant 5.000000e-01 : f32
    %293 = vector.broadcast %cst_85 : f32 to vector<8x128xf32>
    %294 = arith.addf %292, %293 : vector<8x128xf32>
    %295 = arith.mulf %284, %262 : vector<8x128xf32>
    %296 = arith.mulf %276, %286 : vector<8x128xf32>
    %297 = arith.addf %295, %296 : vector<8x128xf32>
    %298 = math.tanh %297 : vector<8x128xf32>
    %299 = arith.mulf %294, %298 : vector<8x128xf32>
    %c0_86 = arith.constant 0 : index
    %c0_87 = arith.constant 0 : index
    %300 = vector.load %arg3[%c0_86, %c0_87] : memref<2x128xf32, #tpu.memory_space<vmem>>, vector<1x128xf32>
    %301 = vector.broadcast %300 : vector<1x128xf32> to vector<8x128xf32>
    %302 = arith.mulf %299, %301 : vector<8x128xf32>
    %cst_88 = arith.constant dense<0.000000e+00> : vector<8xf32>
    %303 = vector.multi_reduction <add>, %302, %cst_88 [1] : vector<8x128xf32> to vector<8xf32>
    %304 = vector.shape_cast %303 : vector<8xf32> to vector<8x1xf32>
    %c1 = arith.constant 1 : index
    %c0_89 = arith.constant 0 : index
    %305 = vector.load %arg3[%c1, %c0_89] : memref<2x128xf32, #tpu.memory_space<vmem>>, vector<1x1xf32>
    %306 = vector.broadcast %305 : vector<1x1xf32> to vector<8x1xf32>
    %307 = arith.addf %304, %306 : vector<8x1xf32>
    %c0_90 = arith.constant 0 : index
    %c0_91 = arith.constant 0 : index
    %308 = vector.load %arg4[%c0_90, %c0_91] : memref<8x1xf32, #tpu.memory_space<vmem>>, vector<8x1xf32>
    tpu.vector_store %arg4[%c0_90, %c0_91], %307 {strides = array<i32>} : memref<8x1xf32, #tpu.memory_space<vmem>>, vector<8x1xf32>,
    return
  }
}

</mosaic_0001>

<bundles_post_ra>
// kernel: tpu_custom_call.1
= control target key start
LH: loop header
LB: loop body
LE: loop exit
PB: predicated region body
PF: predicated region fallthrough
CT: control target
= control target key end

     0   :  { %9 = vsyncpa [#allocation3], 0  ;;  %s1632_s15 = smov [#allocation2]   ;;  %s2391_s0 = inlined_call_operand.vmem [shape: f32[64,2], index: 0, kind: input, shape index: {}]   ;;  %s2392_s1 = inlined_call_operand.vmem [shape: f32[3,512], index: 1, kind: input, shape index: {}]   ;;  %s2393_s2 = inlined_call_operand.hbm [shape: bf16[128,512], index: 2, kind: input, shape index: {}]   ;;  %s2394_s3 = inlined_call_operand.vmem [shape: f32[2,128], index: 3, kind: input, shape index: {}]   ;;  %s2395_s4 = inlined_call_operand.vmem [shape: f32[8,1], index: 4, kind: output, shape index: {}]  }
   0x1   :  { %s19_s16 = sshll.u32 %s1632_s15, 4  ;;  %s1608_s19 = scalar_lea.hbm %s2393_s2, 4096  ;;  %s20_s16 = int_to_ptr.vmem [resolvable:$true] %s19_s16 }
   0x2   :  { %p1609_p0 = scmp.ne.s32.totalorder %s2393_s2, %s1608_s19  ;;  %p1612_p1 = scmp.lt.u32.totalorder %s1608_s19, %s2393_s2 }
   0x4   :  { %p1614_p2 = pnand %p1612_p1, %p1609_p0 }
   0x6   :  { %1617 = shalt.err (!%p1614_p2)
}
   0x7   :  { %s1618_s24 = scalar_lea.vmem %s20_s16, 4096  ;;  %p1623_p4 = scmp.lt.s32.totalorder %s20_s16, %s20_s16 }
   0x8   :  { %p1619_p3 = scmp.ne.s32.totalorder %s20_s16, %s1618_s24  ;;  %p1624_p5 = scmp.lt.s32.totalorder %s1618_s24, %s1618_s24 }
   0xa   :  { %p1625_p6 = por %p1624_p5, %p1623_p4 }
   0xc   :  { %p1626_p7 = pnand %p1625_p6, %p1619_p3 }
   0xe   :  { %1629 = shalt.err (!%p1626_p7)
}
   0xf   :  { %s1633_s25 = smov 256   ;;  %s1634_s26 = smov 16  }
  0x10   :  { %25 = dma.hbm_to_vmem [thread:$0]  %s2393_s2, 4096, %s20_s16, [#allocation3], %s1633_s25, %s1633_s25, %s1634_s26  }
  0x11   :  { %1630 = dma.done.wait [#allocation3], 4096  }
  0x12   :  { %1631 = vsyncadd [#allocation3], 4294963200  ;;  %v2396_v0 = vmov 0   ;;  %v1678_v1 = vld [vmem:[#allocation2 + $0x4] ss:$16 sps:$4 sm:$0xff]   ;;  %v33_v27 = vld [vmem:[%s2391_s0 + $0x8] sm:$0xff]  ;;  %v76_v42 = vlaneseq }
  0x13   :  { %576 = vmatprep.mubr.bf16.mxu0 %v2396_v0  ;;  %617 = vmatprep.mubr.bf16.mxu1 %v2396_v0  ;;  %v1680_v2 = vld [vmem:[#allocation2 + $0xc] ss:$16 sps:$4 sm:$0xff]   ;;  %v1683_v3 = vld [vmem:[#allocation2] ss:$16 sps:$4 sm:$0xff]   ;;  %v1685_v4 = vld [vmem:[#allocation2 + $0x8] ss:$16 sps:$4 sm:$0xff]  }
  0x14   :  { %1445 = vset.pattern.permute.xlu1 %v2396_v0  ;;  %1443 = vset.pattern.permute.xlu0 %v2396_v0  ;;  %v1688_v5 = vld [vmem:[#allocation2 + $0x24] ss:$16 sps:$4 sm:$0xff]   ;;  %v1692_v6 = vld [vmem:[#allocation2 + $0x2c] ss:$16 sps:$4 sm:$0xff]   ;;  %v1694_v7 = vld [vmem:[#allocation2 + $0x20] ss:$16 sps:$4 sm:$0xff]  }
  0x15   :  { %544 = vmatprep.subr.bf16.mxu0 %v1678_v1  ;;  %585 = vmatprep.subr.bf16.mxu1 %v1680_v2  ;;  %v1697_v8 = vld [vmem:[#allocation2 + $0x28] ss:$16 sps:$4 sm:$0xff]   ;;  %v1700_v9 = vld [vmem:[#allocation2 + $0x44] ss:$16 sps:$4 sm:$0xff]   ;;  %v1702_v10 = vld [vmem:[#allocation2 + $0x4c] ss:$16 sps:$4 sm:$0xff]  }
  0x16   :  { %545 = vmatpush1.bf16.msra.mxu0 %v1683_v3  ;;  %586 = vmatpush1.bf16.msra.mxu1 %v1685_v4  ;;  %v1704_v11 = vld [vmem:[#allocation2 + $0x40] ss:$16 sps:$4 sm:$0xff]   ;;  %v1706_v12 = vld [vmem:[#allocation2 + $0x48] ss:$16 sps:$4 sm:$0xff]   ;;  %v1710_v13 = vld [vmem:[#allocation2 + $0x64] ss:$16 sps:$4 sm:$0xff]  }
  0x17   :  { %546 = vmatprep.subr.bf16.mxu0 %v1688_v5  ;;  %587 = vmatprep.subr.bf16.mxu1 %v1692_v6  ;;  %v1714_v14 = vld [vmem:[#allocation2 + $0x6c] ss:$16 sps:$4 sm:$0xff]   ;;  %v1716_v15 = vld [vmem:[#allocation2 + $0x60] ss:$16 sps:$4 sm:$0xff]   ;;  %v1720_v16 = vld [vmem:[#allocation2 + $0x68] ss:$16 sps:$4 sm:$0xff]  }
  0x18   :  { %v1722_v17 = vld [vmem:[#allocation2 + $0x84] ss:$16 sps:$4 sm:$0xff]   ;;  %v1726_v18 = vld [vmem:[#allocation2 + $0x8c] ss:$16 sps:$4 sm:$0xff]   ;;  %v1728_v19 = vld [vmem:[#allocation2 + $0x80] ss:$16 sps:$4 sm:$0xff]   ;;  %119 = vperm.xlu1 %1445, %v33_v27  }
  0x19   :  { %v1730_v20 = vld [vmem:[#allocation2 + $0x88] ss:$16 sps:$4 sm:$0xff]   ;;  %v1734_v21 = vld [vmem:[#allocation2 + $0xa4] ss:$16 sps:$4 sm:$0xff]   ;;  %v1738_v22 = vld [vmem:[#allocation2 + $0xac] ss:$16 sps:$4 sm:$0xff]  }
  0x1a   :  { %547 = vmatpush1.bf16.msra.mxu0 %v1694_v7  ;;  %588 = vmatpush1.bf16.msra.mxu1 %v1697_v8  ;;  %v1740_v23 = vld [vmem:[#allocation2 + $0xa0] ss:$16 sps:$4 sm:$0xff]   ;;  %v1744_v24 = vld [vmem:[#allocation2 + $0xa8] ss:$16 sps:$4 sm:$0xff]   ;;  %v1746_v25 = vld [vmem:[#allocation2 + $0xc4] ss:$16 sps:$4 sm:$0xff]  }
  0x1b   :  { %548 = vmatprep.subr.bf16.mxu0 %v1700_v9  ;;  %589 = vmatprep.subr.bf16.mxu1 %v1702_v10  ;;  %v1750_v26 = vld [vmem:[#allocation2 + $0xcc] ss:$16 sps:$4 sm:$0xff]   ;;  %v32_v28 = vld [vmem:[%s2391_s0] sm:$0xff]  ;;  %v1762_v30 = vld [vmem:[#allocation2 + $0xc8] ss:$16 sps:$4 sm:$0xff]   ;;  %v1636_v33 = vmov 1  }
  0x1c   :  { %114 = vperm.xlu0 %1443, %v32_v28   ;;  %v1760_v29 = vld [vmem:[#allocation2 + $0xc0] ss:$16 sps:$4 sm:$0xff]   ;;  %v1766_v31 = vld [vmem:[#allocation2 + $0xe4] ss:$16 sps:$4 sm:$0xff]   ;;  %v1768_v32 = vld [vmem:[#allocation2 + $0xec] ss:$16 sps:$4 sm:$0xff]   ;;  %1446 = vset.pattern.permute.xlu1 %v1636_v33 }
  0x1d   :  { %257 = vperm.xlu1 %1446, %v33_v27   ;;  %v1772_v34 = vld [vmem:[#allocation2 + $0xe0] ss:$16 sps:$4 sm:$0xff]   ;;  %v1774_v35 = vld [vmem:[#allocation2 + $0xe8] ss:$16 sps:$4 sm:$0xff]   ;;  %v1837_v43 = vshrl.u32 %v76_v42, 7  ;;  %vm1397_vm0 = vcmask 7168  }
  0x1e   :  { %549 = vmatpush1.bf16.msra.mxu0 %v1704_v11  ;;  %590 = vmatpush1.bf16.msra.mxu1 %v1706_v12  ;;  %v34_v36 = vld [vmem:[%s2391_s0 + $0x10] sm:$0xff]  ;;  %v35_v37 = vld [vmem:[%s2391_s0 + $0x18] sm:$0xff]  ;;  %v36_v38 = vld [vmem:[%s2391_s0 + $0x20] sm:$0xff] }
  0x1f   :  { %550 = vmatprep.subr.bf16.mxu0 %v1710_v13  ;;  %591 = vmatprep.subr.bf16.mxu1 %v1714_v14  ;;  %v37_v39 = vld [vmem:[%s2391_s0 + $0x28] sm:$0xff]  ;;  %v38_v40 = vld [vmem:[%s2391_s0 + $0x30] sm:$0xff]  ;;  %v39_v41 = vld [vmem:[%s2391_s0 + $0x38] sm:$0xff]  ;;  %v1840_v44 = vsub.s32 0, %v1837_v43  ;;  %v1847_v47 = vsub.s32 1, %v1837_v43  ;;  %v1850_v48 = vsub.s32 2, %v1837_v43 }
  0x20   :  { %1444 = vset.pattern.permute.xlu0 %v1636_v33  ;;  %v40_v45 = vld [vmem:[%s2392_s1] sm:$0x77] }
  0x21   :  { %253 = vperm.xlu0 %1444, %v32_v28   ;;  %1447 = vset.pattern.permute.xlu1 %v2396_v0  ;;  %v155_v46 = vrot.slane %v40_v45, %v1840_v44  ;;  %v287_v52 = vrot.slane %v40_v45, %v1847_v47  ;;  %v79_v53 = vrot.slane %v40_v45, %v1850_v48 }
  0x22   :  { %551 = vmatpush1.bf16.msra.mxu0 %v1716_v15  ;;  %592 = vmatpush1.bf16.msra.mxu1 %v1720_v16 }
  0x23   :  { %552 = vmatprep.subr.bf16.mxu0 %v1722_v17  ;;  %593 = vmatprep.subr.bf16.mxu1 %v1726_v18  ;;  %v175_v51 = vrot.slane %v155_v46, %v1840_v44  ;;  %v1865_v57 = vrot.slane %v287_v52, %v1847_v47  ;;  %v99_v58 = vrot.slane %v79_v53, %v1850_v48 }
  0x24   :  { %124 = vperm.xlu1 %1447, %v34_v36  }
  0x25   :  { %261 = vperm.xlu0 %1444, %v34_v36  }
  0x26   :  { %553 = vmatpush1.bf16.msra.mxu0 %v1728_v19  ;;  %594 = vmatpush1.bf16.msra.mxu1 %v1730_v20 }
  0x27   :  { %554 = vmatprep.subr.bf16.mxu0 %v1734_v21  ;;  %595 = vmatprep.subr.bf16.mxu1 %v1738_v22 }
  0x28   :  { %129 = vperm.xlu1 %1447, %v35_v37  }
  0x29   :  { %265 = vperm.xlu0 %1444, %v35_v37  }
  0x2a   :  { %555 = vmatpush1.bf16.msra.mxu0 %v1740_v23  ;;  %596 = vmatpush1.bf16.msra.mxu1 %v1744_v24 }
  0x2b   :  { %556 = vmatprep.subr.bf16.mxu0 %v1746_v25  ;;  %597 = vmatprep.subr.bf16.mxu1 %v1750_v26 }
  0x2c   :  { %134 = vperm.xlu1 %1447, %v36_v38  }
  0x2d   :  { %269 = vperm.xlu0 %1444, %v36_v38  }
  0x2e   :  { %557 = vmatpush1.bf16.msra.mxu0 %v1760_v29  ;;  %598 = vmatpush1.bf16.msra.mxu1 %v1762_v30 }
  0x2f   :  { %558 = vmatprep.subr.bf16.mxu0 %v1766_v31  ;;  %599 = vmatprep.subr.bf16.mxu1 %v1768_v32 }
  0x30   :  { %139 = vperm.xlu1 %1447, %v37_v39  }
  0x31   :  { %273 = vperm.xlu0 %1444, %v37_v39  }
  0x32   :  { %559 = vmatpush1.bf16.msra.mxu0 %v1772_v34  ;;  %600 = vmatpush1.bf16.msra.mxu1 %v1774_v35 }
  0x33   :  { %649 = vmatprep.subr.bf16.mxu0 %v1678_v1  ;;  %690 = vmatprep.subr.bf16.mxu1 %v1680_v2 }
  0x34   :  { %144 = vperm.xlu1 %1447, %v38_v40  }
  0x35   :  { %577 = vmatmul.mubr.bf16.vlgmr.msra.gmra.mrb[0].mxu0 %v2396_v0  ;;  %618 = vmatmul.mubr.bf16.vlgmr.msra.gmra.mrb[0].mxu1 %v2396_v0 }
  0x36   :  { %650 = vmatpush1.bf16.msra.mxu0 %v1683_v3  ;;  %691 = vmatpush1.bf16.msra.mxu1 %v1685_v4 }
  0x37   :  { %651 = vmatprep.subr.bf16.mxu0 %v1688_v5  ;;  %692 = vmatprep.subr.bf16.mxu1 %v1692_v6 }
  0x38   :  { %681 = vmatprep.mubr.bf16.mxu0 %v2396_v0  ;;  %722 = vmatprep.mubr.bf16.mxu1 %v2396_v0 }
  0x39   :  { %277 = vperm.xlu0 %1444, %v38_v40   ;;  %149 = vperm.xlu1 %1447, %v39_v41  }
  0x3a   :  { %652 = vmatpush1.bf16.msra.mxu0 %v1694_v7  ;;  %693 = vmatpush1.bf16.msra.mxu1 %v1697_v8 }
  0x3b   :  { %653 = vmatprep.subr.bf16.mxu0 %v1700_v9  ;;  %694 = vmatprep.subr.bf16.mxu1 %v1702_v10 }
  0x3d   :  { %281 = vperm.xlu0 %1444, %v39_v41  }
  0x3e   :  { %654 = vmatpush1.bf16.msra.mxu0 %v1704_v11  ;;  %695 = vmatpush1.bf16.msra.mxu1 %v1706_v12 }
  0x3f   :  { %655 = vmatprep.subr.bf16.mxu0 %v1710_v13  ;;  %696 = vmatprep.subr.bf16.mxu1 %v1714_v14 }
  0x42   :  { %656 = vmatpush1.bf16.msra.mxu0 %v1716_v15  ;;  %697 = vmatpush1.bf16.msra.mxu1 %v1720_v16 }
  0x43   :  { %657 = vmatprep.subr.bf16.mxu0 %v1722_v17  ;;  %698 = vmatprep.subr.bf16.mxu1 %v1726_v18 }
  0x46   :  { %658 = vmatpush1.bf16.msra.mxu0 %v1728_v19  ;;  %699 = vmatpush1.bf16.msra.mxu1 %v1730_v20 }
  0x47   :  { %659 = vmatprep.subr.bf16.mxu0 %v1734_v21  ;;  %700 = vmatprep.subr.bf16.mxu1 %v1738_v22 }
  0x4a   :  { %660 = vmatpush1.bf16.msra.mxu0 %v1740_v23  ;;  %701 = vmatpush1.bf16.msra.mxu1 %v1744_v24 }
  0x4b   :  { %661 = vmatprep.subr.bf16.mxu0 %v1746_v25  ;;  %702 = vmatprep.subr.bf16.mxu1 %v1750_v26 }
  0x4e   :  { %662 = vmatpush1.bf16.msra.mxu0 %v1760_v29  ;;  %703 = vmatpush1.bf16.msra.mxu1 %v1762_v30 }
  0x4f   :  { %663 = vmatprep.subr.bf16.mxu0 %v1766_v31  ;;  %704 = vmatprep.subr.bf16.mxu1 %v1768_v32 }
  0x52   :  { %664 = vmatpush1.bf16.msra.mxu0 %v1772_v34  ;;  %705 = vmatpush1.bf16.msra.mxu1 %v1774_v35 }
  0x53   :  { %754 = vmatprep.subr.bf16.mxu0 %v1678_v1  ;;  %795 = vmatprep.subr.bf16.mxu1 %v1680_v2 }
  0x97   :  { %v1852_v49 = vpop.permute.xlu1 %119 }
  0x98   :  { %v192_v54 = vmul.f32 %v175_v51, %v1852_v49 }
  0x9a   :  { %v224_v60 = vadd.f32 %v192_v54, %v99_v58 }
  0x9b   :  { %v1854_v50 = vpop.permute.xlu0 %114 }
  0x9c   :  { %v1860_v55 = vpop.permute.xlu1 %257 }
  0x9d   :  { %v324_v61 = vmul.f32 %v1865_v57, %v1860_v55 }
  0x9f   :  { %v1874_v63 = vadd.f32 %v324_v61, %v224_v60 }
  0xa0   :  { %v1862_v56 = vpop.permute.xlu0 %253 }
  0xa1   :  { %2434 = vst [vmem:[#allocation7_spill] sm:$0xff] %v1874_v63 }
  0xa3   :  { %v1872_v62 = vpop.permute.xlu1 %124 }
  0xa4   :  { %v1868_v59 = vpop.permute.xlu0 %261  ;;  %2433 = vst [vmem:[#allocation6_spill] sm:$0xff] %v1872_v62  ;;  %v196_v27 = vmul.f32 %v175_v51, %v1872_v62 }
  0xa5   :  { %2432 = vst [vmem:[#allocation5_spill] sm:$0xff] %v1868_v59  ;;  %v328_v28 = vmul.f32 %v1865_v57, %v1868_v59  ;;  %v320_v59 = vmul.f32 %v1865_v57, %v1862_v56 }
  0xa6   :  { %v228_v36 = vadd.f32 %v196_v27, %v99_v58 }
  0xa7   :  { %v1881_v37 = vpop.permute.xlu1 %129 }
  0xa8   :  { %v1879_v33 = vpop.permute.xlu0 %265  ;;  %2436 = vst [vmem:[#allocation9_spill] sm:$0xff] %v1881_v37  ;;  %v200_v38 = vmul.f32 %v175_v51, %v1881_v37  ;;  %v1884_v39 = vadd.f32 %v328_v28, %v228_v36 }
  0xa9   :  { %2435 = vst [vmem:[#allocation8_spill] sm:$0xff] %v1879_v33  ;;  %v332_v40 = vmul.f32 %v1865_v57, %v1879_v33 }
  0xaa   :  { %2437 = vst [vmem:[#allocation10_spill] sm:$0xff] %v1884_v39  ;;  %v232_v42 = vadd.f32 %v200_v38, %v99_v58 }
  0xab   :  { %v1890_v46 = vpop.permute.xlu1 %134 }
  0xac   :  { %v1888_v41 = vpop.permute.xlu0 %269  ;;  %2439 = vst [vmem:[#allocation12_spill] sm:$0xff] %v1890_v46  ;;  %v204_v52 = vmul.f32 %v175_v51, %v1890_v46  ;;  %v1893_v53 = vadd.f32 %v332_v40, %v232_v42 }
  0xad   :  { %2438 = vst [vmem:[#allocation11_spill] sm:$0xff] %v1888_v41  ;;  %v336_v54 = vmul.f32 %v1865_v57, %v1888_v41 }
  0xae   :  { %2440 = vst [vmem:[#allocation13_spill] sm:$0xff] %v1893_v53  ;;  %v236_v61 = vadd.f32 %v204_v52, %v99_v58 }
  0xaf   :  { %v1899_v27 = vpop.permute.xlu1 %139 }
  0xb0   :  { %v1897_v60 = vpop.permute.xlu0 %273  ;;  %2442 = vst [vmem:[#allocation15_spill] sm:$0xff] %v1899_v27  ;;  %v208_v28 = vmul.f32 %v175_v51, %v1899_v27  ;;  %v1902_v36 = vadd.f32 %v336_v54, %v236_v61 }
  0xb1   :  { %2441 = vst [vmem:[#allocation14_spill] sm:$0xff] %v1897_v60  ;;  %v340_v38 = vmul.f32 %v1865_v57, %v1897_v60 }
  0xb2   :  { %2443 = vst [vmem:[#allocation16_spill] sm:$0xff] %v1902_v36  ;;  %v240_v46 = vadd.f32 %v208_v28, %v99_v58 }
  0xb3   :  { %v1908_v40 = vpop.permute.xlu1 %144 }
  0xb4   :  { %2445 = vst [vmem:[#allocation18_spill] sm:$0xff] %v1908_v40  ;;  %v212_v42 = vmul.f32 %v175_v51, %v1908_v40  ;;  %v1911_v41 = vadd.f32 %v340_v38, %v240_v46  ;;  %v158_v46 = vsub.s32 4, %v1837_v43  ;;  %v41_v38 = vld [vmem:[%s2392_s1 + $0x8] sm:$0x77]  ;;  %v82_v40 = vsub.s32 6, %v1837_v43 }
  0xb6   :  { %2446 = vst [vmem:[#allocation19_spill] sm:$0xff] %v1911_v41  ;;  %v244_v27 = vadd.f32 %v212_v42, %v99_v58  ;;  %v290_v42 = vsub.s32 5, %v1837_v43  ;;  %v91_v37 = vrot.slane %v41_v38, %v82_v40 }
  0xb8   :  { %v1906_v0 = vpop.permute.xlu0 %277  ;;  %v1917_v54 = vpop.permute.xlu1 %149 }
  0xb9   :  { %2444 = vst [vmem:[#allocation17_spill] sm:$0xff] %v1906_v0  ;;  %v344_v52 = vmul.f32 %v1865_v57, %v1906_v0  ;;  %2448 = vst [vmem:[#allocation21_spill] sm:$0xff] %v1917_v54  ;;  %v216_v61 = vmul.f32 %v175_v51, %v1917_v54  ;;  %v159_v0 = vrot.slane %v40_v45, %v158_v46 }
  0xba   :  { %v163_v54 = vrot.slane %v41_v38, %v1840_v44 }
  0xbb   :  { %v1922_v28 = vadd.f32 %v344_v52, %v244_v27  ;;  %v248_v36 = vadd.f32 %v216_v61, %v99_v58  ;;  %v291_v27 = vrot.slane %v40_v45, %v290_v42  ;;  %v83_v52 = vrot.slane %v40_v45, %v82_v40 }
  0xbc   :  { %v1915_v53 = vpop.permute.xlu0 %281  ;;  %v1938_v61 = vrot.slane %v163_v54, %v1840_v44  ;;  %v1970_v40 = vrot.slane %v91_v37, %v1850_v48 }
  0xbd   :  { %2447 = vst [vmem:[#allocation20_spill] sm:$0xff] %v1915_v53  ;;  %v348_v60 = vmul.f32 %v1865_v57, %v1915_v53  ;;  %2449 = vst [vmem:[#allocation22_spill] sm:$0xff] %v1922_v28  ;;  %v1934_v53 = vrot.slane %v159_v0, %v1840_v44  ;;  %v87_v28 = vrot.slane %v41_v38, %v1850_v48 }
  0xbe   :  { %v1945_v41 = vrot.slane %v291_v27, %v1847_v47  ;;  %v1948_v0 = vrot.slane %v83_v52, %v1850_v48  ;;  %2454 = vst [vmem:[#allocation27_spill] sm:$0xff] %v1970_v40 }
  0xbf   :  { %v1924_v33 = vadd.f32 %v348_v60, %v248_v36  ;;  %v167_v60 = vrot.slane %v41_v38, %v158_v46  ;;  %v295_v36 = vrot.slane %v41_v38, %v1847_v47  ;;  %v189_v43 = vmul.f32 %v1934_v53, %v1854_v50 }
  0xc0   :  { %2451 = vst [vmem:[#allocation24_spill] sm:$0xff] %v1945_v41  ;;  %2452 = vst [vmem:[#allocation25_spill] sm:$0xff] %v1948_v0  ;;  %v299_v46 = vrot.slane %v41_v38, %v290_v42  ;;  %v1961_v27 = vrot.slane %v87_v28, %v1850_v48 }
  0xc1   :  { %2450 = vst [vmem:[#allocation23_spill] sm:$0xff] %v1924_v33  ;;  %v188_v33 = vmul.f32 %v175_v51, %v1854_v50  ;;  %v1951_v45 = vrot.slane %v167_v60, %v1840_v44  ;;  %v1954_v54 = vrot.slane %v295_v36, %v1847_v47  ;;  %v190_v51 = vmul.f32 %v1938_v61, %v1854_v50 }
  0xc2   :  { %v221_v52 = vadd.f32 %v189_v43, %v1948_v0  ;;  %v321_v44 = vmul.f32 %v1945_v41, %v1862_v56  ;;  %v1967_v42 = vrot.slane %v299_v46, %v1847_v47 }
  0xc3   :  { %2453 = vst [vmem:[#allocation26_spill] sm:$0xff] %v1954_v54  ;;  %v220_v39 = vadd.f32 %v188_v33, %v99_v58  ;;  %v191_v58 = vmul.f32 %v1951_v45, %v1854_v50  ;;  %v222_v57 = vadd.f32 %v190_v51, %v1961_v27  ;;  %v322_v28 = vmul.f32 %v1954_v54, %v1862_v56 }
  0xc4   :  { %v353_v36 = vadd.f32 %v321_v44, %v221_v52  ;;  %v323_v50 = vmul.f32 %v1967_v42, %v1862_v56 }
  0xc5   :  { %v352_v33 = vadd.f32 %v320_v59, %v220_v39  ;;  %v354_v37 = vadd.f32 %v322_v28, %v222_v57  ;;  %v223_v0 = vadd.f32 %v191_v58, %v1970_v40 }
  0xc7   :  { %v355_v52 = vadd.f32 %v323_v50, %v223_v0  ;;  %v194_v50 = vmul.f32 %v1938_v61, %v1852_v49 }
 0x108   :  { %v578_v38 = vpop.f32.mrb[0].mxu0  ;;  %v619_v60 = vpop.f32.mrb[0].mxu1 }
 0x109   :  { %v626_v43 = vadd.f32 %v578_v38, %v352_v33  ;;  %v580_v62 = vpop.f32.mrb[1].mxu0  ;;  %v621_v63 = vpop.f32.mrb[1].mxu1  ;;  %v628_v54 = vadd.f32 %v619_v60, %v354_v37  ;;  %v2455_v37 = vmov 0  }
 0x10a   :  { %v627_v47 = vadd.f32 %v580_v62, %v353_v36  ;;  %v582_v46 = vpop.f32.mrb[2].mxu0  ;;  %v623_v41 = vpop.f32.mrb[2].mxu1  ;;  %v629_v44 = vadd.f32 %v621_v63, %v355_v52  ;;  %v2456_v52 = vld [vmem:[#allocation26_spill] sm:$0xff] }
 0x10b   :  { %v630_v48 = vmul.f32 0.5, %v626_v43  ;;  %v583_v59 = vpop.f32.mrb[3].mxu0  ;;  %v624_v39 = vpop.f32.mrb[3].mxu1 }
 0x10c   :  { %v634_v51 = vmul.f32 0.5, %v627_v47  ;;  %v639_v33 = vmul.f32 0.5, %v629_v44  ;;  %v193_v59 = vmul.f32 %v1934_v53, %v1852_v49  ;;  %v195_v39 = vmul.f32 %v1951_v45, %v1852_v49 }
 0x10d   :  { %1496 = vtanh.f32 %v630_v48  ;;  %v326_v44 = vmul.f32 %v2456_v52, %v1860_v55 }
 0x10e   :  { %1498 = vtanh.f32 %v634_v51  ;;  %v226_v51 = vadd.f32 %v194_v50, %v1961_v27 }
 0x10f   :  { %1500 = vtanh.f32 %v628_v54 }
 0x110   :  { %1502 = vtanh.f32 %v639_v33  ;;  %v2457_v33 = vld [vmem:[#allocation25_spill] sm:$0xff] }
 0x117   :  { %v1497_v62 = vpop.eup %1496 }
 0x118   :  { %v1499_v38 = vpop.eup %1498  ;;  %v632_v41 = vmul.f32 0.5, %v1497_v62  ;;  %v225_v62 = vadd.f32 %v193_v59, %v2457_v33 }
 0x119   :  { %v636_v36 = vmul.f32 0.5, %v1499_v38  ;;  %v1501_v58 = vpop.eup %1500  ;;  %v2458_v38 = vld [vmem:[#allocation24_spill] sm:$0xff] }
 0x11a   :  { %v633_v57 = vadd.f32 0.5, %v632_v41  ;;  %v1503_v60 = vpop.eup %1502  ;;  %v325_v41 = vmul.f32 %v2458_v38, %v1860_v55 }
 0x11b   :  { %v637_v28 = vadd.f32 0.5, %v636_v36  ;;  %v641_v47 = vmul.f32 0.5, %v1503_v60  ;;  %v227_v36 = vadd.f32 %v195_v39, %v1970_v40  ;;  %v2459_v60 = vld [vmem:[#allocation7_spill] sm:$0xff] }
 0x11c   :  { %v644_v43 = vmul.f32 %v1501_v58, %v633_v57  ;;  %v327_v57 = vmul.f32 %v1967_v42, %v1860_v55  ;;  %v358_v58 = vadd.f32 %v326_v44, %v226_v51 }
 0x11d   :  { %v643_v56 = vmul.f32 0.0, %v637_v28  ;;  %v642_v0 = vadd.f32 0.5, %v641_v47 }
 0x11e   :  { %v359_v49 = vadd.f32 %v327_v57, %v227_v36 }
 0x11f   :  { %v1980_v46 = vadd.f32 %v644_v43, %v643_v56  ;;  %v357_v56 = vadd.f32 %v325_v41, %v225_v62 }
 0x121   :  { %1504 = vtanh.f32 %v1980_v46 }
 0x12b   :  { %v1505_v54 = vpop.eup %1504 }
 0x12c   :  { %v647_v63 = vmul.f32 %v1505_v54, %v642_v0 }
 0x12e   :  { %v648_v48 = vpack.c.bf16 %v647_v63, %v647_v63 }
 0x130   :  { %682 = vmatmul.mubr.bf16.vlgmr.msra.gmra.mrb[4].mxu0 %v648_v48  ;;  %723 = vmatmul.mubr.bf16.vlgmr.msra.gmra.mrb[4].mxu1 %v648_v48 }
 0x131   :  { %755 = vmatpush1.bf16.msra.mxu0 %v1683_v3  ;;  %796 = vmatpush1.bf16.msra.mxu1 %v1685_v4 }
 0x132   :  { %756 = vmatprep.subr.bf16.mxu0 %v1688_v5  ;;  %797 = vmatprep.subr.bf16.mxu1 %v1692_v6 }
 0x133   :  { %786 = vmatprep.mubr.bf16.mxu0 %v2455_v37  ;;  %827 = vmatprep.mubr.bf16.mxu1 %v2455_v37 }
 0x135   :  { %757 = vmatpush1.bf16.msra.mxu0 %v1694_v7  ;;  %798 = vmatpush1.bf16.msra.mxu1 %v1697_v8 }
 0x136   :  { %758 = vmatprep.subr.bf16.mxu0 %v1700_v9  ;;  %799 = vmatprep.subr.bf16.mxu1 %v1702_v10 }
 0x139   :  { %759 = vmatpush1.bf16.msra.mxu0 %v1704_v11  ;;  %800 = vmatpush1.bf16.msra.mxu1 %v1706_v12 }
 0x13a   :  { %760 = vmatprep.subr.bf16.mxu0 %v1710_v13  ;;  %801 = vmatprep.subr.bf16.mxu1 %v1714_v14 }
 0x13d   :  { %761 = vmatpush1.bf16.msra.mxu0 %v1716_v15  ;;  %802 = vmatpush1.bf16.msra.mxu1 %v1720_v16 }
 0x13e   :  { %762 = vmatprep.subr.bf16.mxu0 %v1722_v17  ;;  %803 = vmatprep.subr.bf16.mxu1 %v1726_v18 }
 0x141   :  { %763 = vmatpush1.bf16.msra.mxu0 %v1728_v19  ;;  %804 = vmatpush1.bf16.msra.mxu1 %v1730_v20 }
 0x142   :  { %764 = vmatprep.subr.bf16.mxu0 %v1734_v21  ;;  %805 = vmatprep.subr.bf16.mxu1 %v1738_v22 }
 0x145   :  { %765 = vmatpush1.bf16.msra.mxu0 %v1740_v23  ;;  %806 = vmatpush1.bf16.msra.mxu1 %v1744_v24 }
 0x146   :  { %766 = vmatprep.subr.bf16.mxu0 %v1746_v25  ;;  %807 = vmatprep.subr.bf16.mxu1 %v1750_v26 }
 0x149   :  { %767 = vmatpush1.bf16.msra.mxu0 %v1760_v29  ;;  %808 = vmatpush1.bf16.msra.mxu1 %v1762_v30 }
 0x14a   :  { %768 = vmatprep.subr.bf16.mxu0 %v1766_v31  ;;  %809 = vmatprep.subr.bf16.mxu1 %v1768_v32 }
 0x14d   :  { %769 = vmatpush1.bf16.msra.mxu0 %v1772_v34  ;;  %810 = vmatpush1.bf16.msra.mxu1 %v1774_v35 }
 0x14e   :  { %859 = vmatprep.subr.bf16.mxu0 %v1678_v1  ;;  %900 = vmatprep.subr.bf16.mxu1 %v1680_v2 }
 0x203   :  { %v683_v28 = vpop.f32.mrb[4].mxu0  ;;  %v724_v43 = vpop.f32.mrb[4].mxu1 }
 0x204   :  { %v731_v47 = vadd.f32 %v683_v28, %v2459_v60  ;;  %v733_v0 = vadd.f32 %v724_v43, %v358_v58  ;;  %v685_v54 = vpop.f32.mrb[5].mxu0  ;;  %v726_v63 = vpop.f32.mrb[5].mxu1 }
 0x205   :  { %v732_v48 = vadd.f32 %v685_v54, %v357_v56  ;;  %v734_v50 = vadd.f32 %v726_v63, %v359_v49  ;;  %v687_v59 = vpop.f32.mrb[6].mxu0  ;;  %v728_v33 = vpop.f32.mrb[6].mxu1 }
 0x206   :  { %v735_v38 = vmul.f32 0.5, %v731_v47  ;;  %v688_v52 = vpop.f32.mrb[7].mxu0  ;;  %v729_v39 = vpop.f32.mrb[7].mxu1 }
 0x207   :  { %v739_v40 = vmul.f32 0.5, %v732_v48  ;;  %v744_v55 = vmul.f32 0.5, %v734_v50  ;;  %v2461_v48 = vld [vmem:[#allocation5_spill] sm:$0xff]  ;;  %v2462_v50 = vld [vmem:[#allocation26_spill] sm:$0xff] }
 0x208   :  { %1506 = vtanh.f32 %v735_v38  ;;  %v330_v59 = vmul.f32 %v2462_v50, %v2461_v48  ;;  %v2463_v39 = vld [vmem:[#allocation25_spill] sm:$0xff] }
 0x209   :  { %1508 = vtanh.f32 %v739_v40 }
 0x20a   :  { %1510 = vtanh.f32 %v733_v0 }
 0x20b   :  { %1512 = vtanh.f32 %v744_v55 }
 0x212   :  { %v1507_v51 = vpop.eup %1506 }
 0x213   :  { %v1509_v44 = vpop.eup %1508  ;;  %v737_v62 = vmul.f32 0.5, %v1507_v51  ;;  %v2464_v51 = vld [vmem:[#allocation24_spill] sm:$0xff] }
 0x214   :  { %v741_v41 = vmul.f32 0.5, %v1509_v44  ;;  %v1511_v57 = vpop.eup %1510  ;;  %v329_v44 = vmul.f32 %v2464_v51, %v2461_v48 }
 0x215   :  { %v738_v36 = vadd.f32 0.5, %v737_v62  ;;  %v1513_v52 = vpop.eup %1512  ;;  %v2465_v62 = vld [vmem:[#allocation27_spill] sm:$0xff] }
 0x216   :  { %v742_v58 = vadd.f32 0.5, %v741_v41  ;;  %v746_v38 = vmul.f32 0.5, %v1513_v52 }
 0x217   :  { %v749_v28 = vmul.f32 %v1511_v57, %v738_v36  ;;  %v331_v36 = vmul.f32 %v1967_v42, %v2461_v48 }
 0x218   :  { %v748_v43 = vmul.f32 %v742_v58, %v1980_v46  ;;  %v747_v40 = vadd.f32 0.5, %v746_v38  ;;  %v2460_v46 = vld [vmem:[#allocation6_spill] sm:$0xff] }
 0x219   :  { %v198_v47 = vmul.f32 %v1938_v61, %v2460_v46  ;;  %v197_v0 = vmul.f32 %v1934_v53, %v2460_v46  ;;  %v199_v54 = vmul.f32 %v1951_v45, %v2460_v46  ;;  %v2466_v38 = vld [vmem:[#allocation10_spill] sm:$0xff] }
 0x21a   :  { %v2034_v33 = vadd.f32 %v749_v28, %v748_v43 }
 0x21b   :  { %v230_v63 = vadd.f32 %v198_v47, %v1961_v27  ;;  %v229_v55 = vadd.f32 %v197_v0, %v2463_v39  ;;  %v231_v41 = vadd.f32 %v199_v54, %v2465_v62 }
 0x21c   :  { %1514 = vtanh.f32 %v2034_v33 }
 0x21d   :  { %v362_v57 = vadd.f32 %v330_v59, %v230_v63  ;;  %v361_v43 = vadd.f32 %v329_v44, %v229_v55  ;;  %v363_v52 = vadd.f32 %v331_v36, %v231_v41 }
 0x226   :  { %v1515_v56 = vpop.eup %1514 }
 0x227   :  { %v752_v49 = vmul.f32 %v1515_v56, %v747_v40 }
 0x229   :  { %v753_v60 = vpack.c.bf16 %v752_v49, %v752_v49 }
 0x22b   :  { %787 = vmatmul.mubr.bf16.vlgmr.msra.gmra.mrb[8].mxu0 %v753_v60  ;;  %828 = vmatmul.mubr.bf16.vlgmr.msra.gmra.mrb[8].mxu1 %v753_v60 }
 0x22c   :  { %860 = vmatpush1.bf16.msra.mxu0 %v1683_v3  ;;  %901 = vmatpush1.bf16.msra.mxu1 %v1685_v4 }
 0x22d   :  { %861 = vmatprep.subr.bf16.mxu0 %v1688_v5  ;;  %902 = vmatprep.subr.bf16.mxu1 %v1692_v6 }
 0x22e   :  { %891 = vmatprep.mubr.bf16.mxu0 %v2455_v37  ;;  %932 = vmatprep.mubr.bf16.mxu1 %v2455_v37 }
 0x230   :  { %862 = vmatpush1.bf16.msra.mxu0 %v1694_v7  ;;  %903 = vmatpush1.bf16.msra.mxu1 %v1697_v8 }
 0x231   :  { %863 = vmatprep.subr.bf16.mxu0 %v1700_v9  ;;  %904 = vmatprep.subr.bf16.mxu1 %v1702_v10 }
 0x234   :  { %864 = vmatpush1.bf16.msra.mxu0 %v1704_v11  ;;  %905 = vmatpush1.bf16.msra.mxu1 %v1706_v12 }
 0x235   :  { %865 = vmatprep.subr.bf16.mxu0 %v1710_v13  ;;  %906 = vmatprep.subr.bf16.mxu1 %v1714_v14 }
 0x238   :  { %866 = vmatpush1.bf16.msra.mxu0 %v1716_v15  ;;  %907 = vmatpush1.bf16.msra.mxu1 %v1720_v16 }
 0x239   :  { %867 = vmatprep.subr.bf16.mxu0 %v1722_v17  ;;  %908 = vmatprep.subr.bf16.mxu1 %v1726_v18 }
 0x23c   :  { %868 = vmatpush1.bf16.msra.mxu0 %v1728_v19  ;;  %909 = vmatpush1.bf16.msra.mxu1 %v1730_v20 }
 0x23d   :  { %869 = vmatprep.subr.bf16.mxu0 %v1734_v21  ;;  %910 = vmatprep.subr.bf16.mxu1 %v1738_v22 }
 0x240   :  { %870 = vmatpush1.bf16.msra.mxu0 %v1740_v23  ;;  %911 = vmatpush1.bf16.msra.mxu1 %v1744_v24 }
 0x241   :  { %871 = vmatprep.subr.bf16.mxu0 %v1746_v25  ;;  %912 = vmatprep.subr.bf16.mxu1 %v1750_v26 }
 0x244   :  { %872 = vmatpush1.bf16.msra.mxu0 %v1760_v29  ;;  %913 = vmatpush1.bf16.msra.mxu1 %v1762_v30 }
 0x245   :  { %873 = vmatprep.subr.bf16.mxu0 %v1766_v31  ;;  %914 = vmatprep.subr.bf16.mxu1 %v1768_v32 }
 0x248   :  { %874 = vmatpush1.bf16.msra.mxu0 %v1772_v34  ;;  %915 = vmatpush1.bf16.msra.mxu1 %v1774_v35 }
 0x249   :  { %964 = vmatprep.subr.bf16.mxu0 %v1678_v1  ;;  %1005 = vmatprep.subr.bf16.mxu1 %v1680_v2 }
 0x2fe   :  { %v788_v58 = vpop.f32.mrb[8].mxu0  ;;  %v829_v28 = vpop.f32.mrb[8].mxu1 }
 0x2ff   :  { %v836_v40 = vadd.f32 %v788_v58, %v2466_v38  ;;  %v838_v56 = vadd.f32 %v829_v28, %v362_v57  ;;  %v790_v49 = vpop.f32.mrb[9].mxu0  ;;  %v831_v60 = vpop.f32.mrb[9].mxu1 }
 0x300   :  { %v837_v46 = vadd.f32 %v790_v49, %v361_v43  ;;  %v839_v47 = vadd.f32 %v831_v60, %v363_v52  ;;  %v792_v0 = vpop.f32.mrb[10].mxu0  ;;  %v833_v39 = vpop.f32.mrb[10].mxu1 }
 0x301   :  { %v840_v51 = vmul.f32 0.5, %v836_v40  ;;  %v793_v50 = vpop.f32.mrb[11].mxu0  ;;  %v834_v54 = vpop.f32.mrb[11].mxu1 }
 0x302   :  { %v844_v62 = vmul.f32 0.5, %v837_v46  ;;  %v849_v63 = vmul.f32 0.5, %v839_v47 }
 0x303   :  { %1516 = vtanh.f32 %v840_v51 }
 0x304   :  { %1518 = vtanh.f32 %v844_v62 }
 0x305   :  { %1520 = vtanh.f32 %v838_v56  ;;  %v2473_v56 = vld [vmem:[#allocation13_spill] sm:$0xff] }
 0x306   :  { %1522 = vtanh.f32 %v849_v63 }
 0x30d   :  { %v1517_v48 = vpop.eup %1516 }
 0x30e   :  { %v1519_v59 = vpop.eup %1518  ;;  %v842_v55 = vmul.f32 0.5, %v1517_v48 }
 0x30f   :  { %v846_v44 = vmul.f32 0.5, %v1519_v59  ;;  %v1521_v36 = vpop.eup %1520 }
 0x310   :  { %v843_v41 = vadd.f32 0.5, %v842_v55  ;;  %v1523_v50 = vpop.eup %1522 }
 0x311   :  { %v847_v57 = vadd.f32 0.5, %v846_v44  ;;  %v851_v51 = vmul.f32 0.5, %v1523_v50 }
 0x312   :  { %v854_v58 = vmul.f32 %v1521_v36, %v843_v41 }
 0x313   :  { %v853_v28 = vmul.f32 %v847_v57, %v2034_v33  ;;  %v852_v62 = vadd.f32 0.5, %v851_v51 }
 0x315   :  { %v2088_v39 = vadd.f32 %v854_v58, %v853_v28 }
 0x317   :  { %1524 = vtanh.f32 %v2088_v39 }
 0x321   :  { %v1525_v43 = vpop.eup %1524 }
 0x322   :  { %v857_v52 = vmul.f32 %v1525_v43, %v852_v62 }
 0x324   :  { %v858_v38 = vpack.c.bf16 %v857_v52, %v857_v52 }
 0x326   :  { %892 = vmatmul.mubr.bf16.vlgmr.msra.gmra.mrb[12].mxu0 %v858_v38  ;;  %933 = vmatmul.mubr.bf16.vlgmr.msra.gmra.mrb[12].mxu1 %v858_v38 }
 0x327   :  { %965 = vmatpush1.bf16.msra.mxu0 %v1683_v3  ;;  %1006 = vmatpush1.bf16.msra.mxu1 %v1685_v4  ;;  %v2467_v3 = vld [vmem:[#allocation9_spill] sm:$0xff] }
 0x328   :  { %966 = vmatprep.subr.bf16.mxu0 %v1688_v5  ;;  %1007 = vmatprep.subr.bf16.mxu1 %v1692_v6  ;;  %v202_v4 = vmul.f32 %v1938_v61, %v2467_v3  ;;  %v201_v5 = vmul.f32 %v1934_v53, %v2467_v3  ;;  %v203_v6 = vmul.f32 %v1951_v45, %v2467_v3 }
 0x329   :  { %996 = vmatprep.mubr.bf16.mxu0 %v2455_v37  ;;  %1037 = vmatprep.mubr.bf16.mxu1 %v2455_v37 }
 0x32b   :  { %967 = vmatpush1.bf16.msra.mxu0 %v1694_v7  ;;  %1008 = vmatpush1.bf16.msra.mxu1 %v1697_v8  ;;  %v234_v7 = vadd.f32 %v202_v4, %v1961_v27  ;;  %v2468_v8 = vld [vmem:[#allocation8_spill] sm:$0xff] }
 0x32c   :  { %968 = vmatprep.subr.bf16.mxu0 %v1700_v9  ;;  %1009 = vmatprep.subr.bf16.mxu1 %v1702_v10  ;;  %v2469_v9 = vld [vmem:[#allocation26_spill] sm:$0xff] }
 0x32d   :  { %v334_v10 = vmul.f32 %v2469_v9, %v2468_v8 }
 0x32f   :  { %969 = vmatpush1.bf16.msra.mxu0 %v1704_v11  ;;  %1010 = vmatpush1.bf16.msra.mxu1 %v1706_v12  ;;  %v2470_v11 = vld [vmem:[#allocation25_spill] sm:$0xff] }
 0x330   :  { %970 = vmatprep.subr.bf16.mxu0 %v1710_v13  ;;  %1011 = vmatprep.subr.bf16.mxu1 %v1714_v14  ;;  %v233_v12 = vadd.f32 %v201_v5, %v2470_v11 }
 0x333   :  { %971 = vmatpush1.bf16.msra.mxu0 %v1716_v15  ;;  %1012 = vmatpush1.bf16.msra.mxu1 %v1720_v16  ;;  %v335_v15 = vmul.f32 %v1967_v42, %v2468_v8  ;;  %v366_v16 = vadd.f32 %v334_v10, %v234_v7 }
 0x334   :  { %972 = vmatprep.subr.bf16.mxu0 %v1722_v17  ;;  %1013 = vmatprep.subr.bf16.mxu1 %v1726_v18 }
 0x337   :  { %973 = vmatpush1.bf16.msra.mxu0 %v1728_v19  ;;  %1014 = vmatpush1.bf16.msra.mxu1 %v1730_v20 }
 0x338   :  { %974 = vmatprep.subr.bf16.mxu0 %v1734_v21  ;;  %1015 = vmatprep.subr.bf16.mxu1 %v1738_v22 }
 0x33b   :  { %975 = vmatpush1.bf16.msra.mxu0 %v1740_v23  ;;  %1016 = vmatpush1.bf16.msra.mxu1 %v1744_v24 }
 0x33c   :  { %976 = vmatprep.subr.bf16.mxu0 %v1746_v25  ;;  %1017 = vmatprep.subr.bf16.mxu1 %v1750_v26 }
 0x33f   :  { %977 = vmatpush1.bf16.msra.mxu0 %v1760_v29  ;;  %1018 = vmatpush1.bf16.msra.mxu1 %v1762_v30 }
 0x340   :  { %978 = vmatprep.subr.bf16.mxu0 %v1766_v31  ;;  %1019 = vmatprep.subr.bf16.mxu1 %v1768_v32 }
 0x343   :  { %979 = vmatpush1.bf16.msra.mxu0 %v1772_v34  ;;  %1020 = vmatpush1.bf16.msra.mxu1 %v1774_v35 }
 0x344   :  { %1069 = vmatprep.subr.bf16.mxu0 %v1678_v1  ;;  %1110 = vmatprep.subr.bf16.mxu1 %v1680_v2  ;;  %v2471_v1 = vld [vmem:[#allocation24_spill] sm:$0xff]  ;;  %v2472_v2 = vld [vmem:[#allocation27_spill] sm:$0xff] }
 0x345   :  { %v333_v13 = vmul.f32 %v2471_v1, %v2468_v8  ;;  %v235_v14 = vadd.f32 %v203_v6, %v2472_v2 }
 0x347   :  { %v365_v33 = vadd.f32 %v333_v13, %v233_v12  ;;  %v367_v40 = vadd.f32 %v335_v15, %v235_v14  ;;  %v2145_v12 = vld [vmem:[#allocation2] ss:$16 sps:$4 sm:$0xff]   ;;  %v2148_v13 = vld [vmem:[#allocation2 + $0x8] ss:$16 sps:$4 sm:$0xff]   ;;  %v2154_v14 = vld [vmem:[#allocation2 + $0x2c] ss:$16 sps:$4 sm:$0xff]  }
 0x348   :  { %v2159_v15 = vld [vmem:[#allocation2 + $0x20] ss:$16 sps:$4 sm:$0xff]  }
 0x3f9   :  { %v893_v17 = vpop.f32.mrb[12].mxu0  ;;  %v934_v18 = vpop.f32.mrb[12].mxu1 }
 0x3fa   :  { %v941_v49 = vadd.f32 %v893_v17, %v2473_v56  ;;  %v943_v60 = vadd.f32 %v934_v18, %v366_v16  ;;  %v895_v46 = vpop.f32.mrb[13].mxu0  ;;  %v936_v47 = vpop.f32.mrb[13].mxu1  ;;  %v2162_v16 = vld [vmem:[#allocation2 + $0x28] ss:$16 sps:$4 sm:$0xff]   ;;  %v2165_v17 = vld [vmem:[#allocation2 + $0x44] ss:$16 sps:$4 sm:$0xff]  }
 0x3fb   :  { %v942_v0 = vadd.f32 %v895_v46, %v365_v33  ;;  %v944_v54 = vadd.f32 %v936_v47, %v367_v40  ;;  %v897_v63 = vpop.f32.mrb[14].mxu0  ;;  %v938_v48 = vpop.f32.mrb[14].mxu1  ;;  %v2168_v18 = vld [vmem:[#allocation2 + $0x4c] ss:$16 sps:$4 sm:$0xff]   ;;  %v2171_v33 = vld [vmem:[#allocation2 + $0x40] ss:$16 sps:$4 sm:$0xff]  }
 0x3fc   :  { %v945_v59 = vmul.f32 0.5, %v941_v49  ;;  %v898_v55 = vpop.f32.mrb[15].mxu0  ;;  %v939_v44 = vpop.f32.mrb[15].mxu1  ;;  %v2174_v40 = vld [vmem:[#allocation2 + $0x48] ss:$16 sps:$4 sm:$0xff]  }
 0x3fd   :  { %v949_v41 = vmul.f32 0.5, %v942_v0  ;;  %v954_v36 = vmul.f32 0.5, %v944_v54  ;;  %v2177_v56 = vld [vmem:[#allocation2 + $0x64] ss:$16 sps:$4 sm:$0xff]   ;;  %v2180_v49 = vld [vmem:[#allocation2 + $0x6c] ss:$16 sps:$4 sm:$0xff]  }
 0x3fe   :  { %1526 = vtanh.f32 %v945_v59  ;;  %v2186_v46 = vld [vmem:[#allocation2 + $0x68] ss:$16 sps:$4 sm:$0xff]   ;;  %v2189_v47 = vld [vmem:[#allocation2 + $0x84] ss:$16 sps:$4 sm:$0xff]   ;;  %v2192_v0 = vld [vmem:[#allocation2 + $0x8c] ss:$16 sps:$4 sm:$0xff]  }
 0x3ff   :  { %1528 = vtanh.f32 %v949_v41  ;;  %v2476_v55 = vld [vmem:[#allocation16_spill] sm:$0xff] }
 0x400   :  { %1530 = vtanh.f32 %v943_v60  ;;  %v2183_v60 = vld [vmem:[#allocation2 + $0x60] ss:$16 sps:$4 sm:$0xff]  }
 0x401   :  { %1532 = vtanh.f32 %v954_v36 }
 0x408   :  { %v1527_v57 = vpop.eup %1526 }
 0x409   :  { %v1529_v58 = vpop.eup %1528  ;;  %v947_v28 = vmul.f32 0.5, %v1527_v57 }
 0x40a   :  { %v951_v50 = vmul.f32 0.5, %v1529_v58  ;;  %v1531_v62 = vpop.eup %1530 }
 0x40b   :  { %v948_v51 = vadd.f32 0.5, %v947_v28  ;;  %v1533_v4 = vpop.eup %1532 }
 0x40c   :  { %v952_v43 = vadd.f32 0.5, %v951_v50  ;;  %v956_v5 = vmul.f32 0.5, %v1533_v4 }
 0x40d   :  { %v959_v52 = vmul.f32 %v1531_v62, %v948_v51 }
 0x40e   :  { %v958_v38 = vmul.f32 %v952_v43, %v2088_v39  ;;  %v957_v6 = vadd.f32 0.5, %v956_v5  ;;  %v2151_v39 = vld [vmem:[#allocation2 + $0x24] ss:$16 sps:$4 sm:$0xff]  }
 0x410   :  { %v2142_v3 = vadd.f32 %v959_v52, %v958_v38 }
 0x412   :  { %1534 = vtanh.f32 %v2142_v3 }
 0x41c   :  { %v1535_v7 = vpop.eup %1534 }
 0x41d   :  { %v962_v8 = vmul.f32 %v1535_v7, %v957_v6 }
 0x41f   :  { %v963_v10 = vpack.c.bf16 %v962_v8, %v962_v8 }
 0x421   :  { %997 = vmatmul.mubr.bf16.vlgmr.msra.gmra.mrb[16].mxu0 %v963_v10  ;;  %1038 = vmatmul.mubr.bf16.vlgmr.msra.gmra.mrb[16].mxu1 %v963_v10 }
 0x422   :  { %1070 = vmatpush1.bf16.msra.mxu0 %v2145_v12  ;;  %1111 = vmatpush1.bf16.msra.mxu1 %v2148_v13 }
 0x423   :  { %1071 = vmatprep.subr.bf16.mxu0 %v2151_v39  ;;  %1112 = vmatprep.subr.bf16.mxu1 %v2154_v14 }
 0x424   :  { %1101 = vmatprep.mubr.bf16.mxu0 %v2455_v37  ;;  %1142 = vmatprep.mubr.bf16.mxu1 %v2455_v37 }
 0x426   :  { %1072 = vmatpush1.bf16.msra.mxu0 %v2159_v15  ;;  %1113 = vmatpush1.bf16.msra.mxu1 %v2162_v16 }
 0x427   :  { %1073 = vmatprep.subr.bf16.mxu0 %v2165_v17  ;;  %1114 = vmatprep.subr.bf16.mxu1 %v2168_v18 }
 0x42a   :  { %1074 = vmatpush1.bf16.msra.mxu0 %v2171_v33  ;;  %1115 = vmatpush1.bf16.msra.mxu1 %v2174_v40 }
 0x42b   :  { %1075 = vmatprep.subr.bf16.mxu0 %v2177_v56  ;;  %1116 = vmatprep.subr.bf16.mxu1 %v2180_v49 }
 0x42e   :  { %1076 = vmatpush1.bf16.msra.mxu0 %v2183_v60  ;;  %1117 = vmatpush1.bf16.msra.mxu1 %v2186_v46 }
 0x42f   :  { %1077 = vmatprep.subr.bf16.mxu0 %v2189_v47  ;;  %1118 = vmatprep.subr.bf16.mxu1 %v2192_v0 }
 0x432   :  { %1078 = vmatpush1.bf16.msra.mxu0 %v1728_v19  ;;  %1119 = vmatpush1.bf16.msra.mxu1 %v1730_v20  ;;  %v2209_v19 = vld [vmem:[#allocation2 + $0x4] ss:$16 sps:$4 sm:$0xff]   ;;  %v2212_v20 = vld [vmem:[#allocation2 + $0xc] ss:$16 sps:$4 sm:$0xff]  }
 0x433   :  { %1079 = vmatprep.subr.bf16.mxu0 %v1734_v21  ;;  %1120 = vmatprep.subr.bf16.mxu1 %v1738_v22  ;;  %v2474_v21 = vld [vmem:[#allocation12_spill] sm:$0xff] }
 0x434   :  { %v206_v22 = vmul.f32 %v1938_v61, %v2474_v21 }
 0x436   :  { %1080 = vmatpush1.bf16.msra.mxu0 %v1740_v23  ;;  %1121 = vmatpush1.bf16.msra.mxu1 %v1744_v24  ;;  %v205_v23 = vmul.f32 %v1934_v53, %v2474_v21  ;;  %v207_v24 = vmul.f32 %v1951_v45, %v2474_v21 }
 0x437   :  { %1081 = vmatprep.subr.bf16.mxu0 %v1746_v25  ;;  %1122 = vmatprep.subr.bf16.mxu1 %v1750_v26  ;;  %v238_v25 = vadd.f32 %v206_v22, %v1961_v27  ;;  %v2475_v26 = vld [vmem:[#allocation11_spill] sm:$0xff] }
 0x43a   :  { %1082 = vmatpush1.bf16.msra.mxu0 %v1760_v29  ;;  %1123 = vmatpush1.bf16.msra.mxu1 %v1762_v30  ;;  %v338_v29 = vmul.f32 %v2469_v9, %v2475_v26  ;;  %v237_v30 = vadd.f32 %v205_v23, %v2470_v11 }
 0x43b   :  { %1083 = vmatprep.subr.bf16.mxu0 %v1766_v31  ;;  %1124 = vmatprep.subr.bf16.mxu1 %v1768_v32  ;;  %v337_v31 = vmul.f32 %v2471_v1, %v2475_v26  ;;  %v239_v32 = vadd.f32 %v207_v24, %v2472_v2 }
 0x43d   :  { %v369_v48 = vadd.f32 %v337_v31, %v237_v30 }
 0x43e   :  { %1084 = vmatpush1.bf16.msra.mxu0 %v1772_v34  ;;  %1125 = vmatpush1.bf16.msra.mxu1 %v1774_v35  ;;  %v339_v34 = vmul.f32 %v1967_v42, %v2475_v26  ;;  %v370_v35 = vadd.f32 %v338_v29, %v238_v25 }
 0x43f   :  { %1174 = vmatprep.subr.bf16.mxu0 %v2209_v19  ;;  %1215 = vmatprep.subr.bf16.mxu1 %v2212_v20 }
 0x440   :  { %v371_v59 = vadd.f32 %v339_v34, %v239_v32 }
 0x4f4   :  { %v998_v54 = vpop.f32.mrb[16].mxu0  ;;  %v1039_v63 = vpop.f32.mrb[16].mxu1 }
 0x4f5   :  { %v1046_v44 = vadd.f32 %v998_v54, %v2476_v55  ;;  %v1048_v41 = vadd.f32 %v1039_v63, %v370_v35  ;;  %v1000_v36 = vpop.f32.mrb[17].mxu0  ;;  %v1041_v57 = vpop.f32.mrb[17].mxu1  ;;  %v2256_v35 = vld [vmem:[#allocation2 + $0x88] ss:$16 sps:$4 sm:$0xff]   ;;  %v2259_v54 = vld [vmem:[#allocation2 + $0xa4] ss:$16 sps:$4 sm:$0xff]  }
 0x4f6   :  { %v1047_v58 = vadd.f32 %v1000_v36, %v369_v48  ;;  %v1049_v28 = vadd.f32 %v1041_v57, %v371_v59  ;;  %v1002_v50 = vpop.f32.mrb[18].mxu0  ;;  %v1043_v51 = vpop.f32.mrb[18].mxu1  ;;  %v2262_v63 = vld [vmem:[#allocation2 + $0xac] ss:$16 sps:$4 sm:$0xff]   ;;  %v2265_v48 = vld [vmem:[#allocation2 + $0xa0] ss:$16 sps:$4 sm:$0xff]  }
 0x4f7   :  { %v1050_v62 = vmul.f32 0.5, %v1046_v44  ;;  %v1003_v43 = vpop.f32.mrb[19].mxu0  ;;  %v1044_v52 = vpop.f32.mrb[19].mxu1  ;;  %v2268_v59 = vld [vmem:[#allocation2 + $0xa8] ss:$16 sps:$4 sm:$0xff]   ;;  %v2477_v51 = vld [vmem:[#allocation15_spill] sm:$0xff] }
 0x4f8   :  { %v1054_v38 = vmul.f32 0.5, %v1047_v58  ;;  %v1059_v4 = vmul.f32 0.5, %v1049_v28  ;;  %v2271_v55 = vld [vmem:[#allocation2 + $0xc4] ss:$16 sps:$4 sm:$0xff]   ;;  %v2274_v44 = vld [vmem:[#allocation2 + $0xcc] ss:$16 sps:$4 sm:$0xff]   ;;  %v209_v43 = vmul.f32 %v1934_v53, %v2477_v51  ;;  %v211_v52 = vmul.f32 %v1951_v45, %v2477_v51 }
 0x4f9   :  { %1536 = vtanh.f32 %v1050_v62  ;;  %v2280_v36 = vld [vmem:[#allocation2 + $0xc8] ss:$16 sps:$4 sm:$0xff]   ;;  %v2283_v57 = vld [vmem:[#allocation2 + $0xe4] ss:$16 sps:$4 sm:$0xff]   ;;  %v2286_v58 = vld [vmem:[#allocation2 + $0xec] ss:$16 sps:$4 sm:$0xff]   ;;  %v210_v62 = vmul.f32 %v1938_v61, %v2477_v51 }
 0x4fa   :  { %1538 = vtanh.f32 %v1054_v38  ;;  %v2289_v28 = vld [vmem:[#allocation2 + $0xe0] ss:$16 sps:$4 sm:$0xff]   ;;  %v2292_v50 = vld [vmem:[#allocation2 + $0xe8] ss:$16 sps:$4 sm:$0xff]  }
 0x4fb   :  { %1540 = vtanh.f32 %v1048_v41  ;;  %v2277_v41 = vld [vmem:[#allocation2 + $0xc0] ss:$16 sps:$4 sm:$0xff]   ;;  %v242_v38 = vadd.f32 %v210_v62, %v1961_v27 }
 0x4fc   :  { %1542 = vtanh.f32 %v1059_v4  ;;  %v2478_v4 = vld [vmem:[#allocation14_spill] sm:$0xff] }
 0x503   :  { %v1537_v5 = vpop.eup %1536 }
 0x504   :  { %v1539_v6 = vpop.eup %1538  ;;  %v1052_v7 = vmul.f32 0.5, %v1537_v5  ;;  %v342_v5 = vmul.f32 %v2469_v9, %v2478_v4 }
 0x505   :  { %v1056_v8 = vmul.f32 0.5, %v1539_v6  ;;  %v1541_v21 = vpop.eup %1540  ;;  %v241_v6 = vadd.f32 %v209_v43, %v2470_v11 }
 0x506   :  { %v1053_v10 = vadd.f32 0.5, %v1052_v7  ;;  %v1543_v26 = vpop.eup %1542  ;;  %v343_v7 = vmul.f32 %v1967_v42, %v2478_v4 }
 0x507   :  { %v1057_v22 = vadd.f32 0.5, %v1056_v8  ;;  %v1061_v29 = vmul.f32 0.5, %v1543_v26  ;;  %v374_v8 = vadd.f32 %v342_v5, %v242_v38 }
 0x508   :  { %v1064_v23 = vmul.f32 %v1541_v21, %v1053_v10 }
 0x509   :  { %v1063_v24 = vmul.f32 %v1057_v22, %v2142_v3  ;;  %v1062_v30 = vadd.f32 0.5, %v1061_v29  ;;  %v2253_v3 = vld [vmem:[#allocation2 + $0x80] ss:$16 sps:$4 sm:$0xff]  }
 0x50b   :  { %v2232_v25 = vadd.f32 %v1064_v23, %v1063_v24  ;;  %v2479_v24 = vld [vmem:[#allocation19_spill] sm:$0xff] }
 0x50d   :  { %1544 = vtanh.f32 %v2232_v25 }
 0x517   :  { %v1545_v31 = vpop.eup %1544 }
 0x518   :  { %v1067_v32 = vmul.f32 %v1545_v31, %v1062_v30 }
 0x51a   :  { %v1068_v34 = vpack.c.bf16 %v1067_v32, %v1067_v32 }
 0x51c   :  { %1102 = vmatmul.mubr.bf16.vlgmr.msra.gmra.mrb[20].mxu0 %v1068_v34  ;;  %1143 = vmatmul.mubr.bf16.vlgmr.msra.gmra.mrb[20].mxu1 %v1068_v34 }
 0x51d   :  { %1175 = vmatpush1.bf16.msra.mxu0 %v2145_v12  ;;  %1216 = vmatpush1.bf16.msra.mxu1 %v2148_v13 }
 0x51e   :  { %1176 = vmatprep.subr.bf16.mxu0 %v2151_v39  ;;  %1217 = vmatprep.subr.bf16.mxu1 %v2154_v14 }
 0x51f   :  { %1206 = vmatprep.mubr.bf16.mxu0 %v2455_v37  ;;  %1247 = vmatprep.mubr.bf16.mxu1 %v2455_v37 }
 0x521   :  { %1177 = vmatpush1.bf16.msra.mxu0 %v2159_v15  ;;  %1218 = vmatpush1.bf16.msra.mxu1 %v2162_v16 }
 0x522   :  { %1178 = vmatprep.subr.bf16.mxu0 %v2165_v17  ;;  %1219 = vmatprep.subr.bf16.mxu1 %v2168_v18 }
 0x525   :  { %1179 = vmatpush1.bf16.msra.mxu0 %v2171_v33  ;;  %1220 = vmatpush1.bf16.msra.mxu1 %v2174_v40 }
 0x526   :  { %1180 = vmatprep.subr.bf16.mxu0 %v2177_v56  ;;  %1221 = vmatprep.subr.bf16.mxu1 %v2180_v49 }
 0x529   :  { %1181 = vmatpush1.bf16.msra.mxu0 %v2183_v60  ;;  %1222 = vmatpush1.bf16.msra.mxu1 %v2186_v46 }
 0x52a   :  { %1182 = vmatprep.subr.bf16.mxu0 %v2189_v47  ;;  %1223 = vmatprep.subr.bf16.mxu1 %v2192_v0 }
 0x52d   :  { %1183 = vmatpush1.bf16.msra.mxu0 %v2253_v3  ;;  %1224 = vmatpush1.bf16.msra.mxu1 %v2256_v35 }
 0x52e   :  { %1184 = vmatprep.subr.bf16.mxu0 %v2259_v54  ;;  %1225 = vmatprep.subr.bf16.mxu1 %v2262_v63 }
 0x531   :  { %1185 = vmatpush1.bf16.msra.mxu0 %v2265_v48  ;;  %1226 = vmatpush1.bf16.msra.mxu1 %v2268_v59 }
 0x532   :  { %1186 = vmatprep.subr.bf16.mxu0 %v2271_v55  ;;  %1227 = vmatprep.subr.bf16.mxu1 %v2274_v44 }
 0x535   :  { %1187 = vmatpush1.bf16.msra.mxu0 %v2277_v41  ;;  %1228 = vmatpush1.bf16.msra.mxu1 %v2280_v36 }
 0x536   :  { %1188 = vmatprep.subr.bf16.mxu0 %v2283_v57  ;;  %1229 = vmatprep.subr.bf16.mxu1 %v2286_v58 }
 0x539   :  { %1189 = vmatpush1.bf16.msra.mxu0 %v2289_v28  ;;  %1230 = vmatpush1.bf16.msra.mxu1 %v2292_v50 }
 0x53a   :  { %1279 = vmatprep.subr.bf16.mxu0 %v2209_v19  ;;  %1320 = vmatprep.subr.bf16.mxu1 %v2212_v20  ;;  %v341_v19 = vmul.f32 %v2471_v1, %v2478_v4  ;;  %v243_v20 = vadd.f32 %v211_v52, %v2472_v2 }
 0x53c   :  { %v373_v22 = vadd.f32 %v341_v19, %v241_v6  ;;  %v375_v23 = vadd.f32 %v343_v7, %v243_v20 }
 0x5ef   :  { %v1103_v10 = vpop.f32.mrb[20].mxu0  ;;  %v1144_v21 = vpop.f32.mrb[20].mxu1 }
 0x5f0   :  { %v1151_v26 = vadd.f32 %v1103_v10, %v2479_v24  ;;  %v1153_v29 = vadd.f32 %v1144_v21, %v374_v8  ;;  %v1105_v30 = vpop.f32.mrb[21].mxu0  ;;  %v1146_v31 = vpop.f32.mrb[21].mxu1 }
 0x5f1   :  { %v1152_v32 = vadd.f32 %v1105_v30, %v373_v22  ;;  %v1154_v34 = vadd.f32 %v1146_v31, %v375_v23  ;;  %v1107_v51 = vpop.f32.mrb[22].mxu0  ;;  %v1148_v62 = vpop.f32.mrb[22].mxu1 }
 0x5f2   :  { %v1155_v43 = vmul.f32 0.5, %v1151_v26  ;;  %v1108_v1 = vpop.f32.mrb[23].mxu0  ;;  %v1149_v52 = vpop.f32.mrb[23].mxu1 }
 0x5f3   :  { %v1159_v2 = vmul.f32 0.5, %v1152_v32  ;;  %v1164_v38 = vmul.f32 0.5, %v1154_v34 }
 0x5f4   :  { %1546 = vtanh.f32 %v1155_v43 }
 0x5f5   :  { %1548 = vtanh.f32 %v1159_v2 }
 0x5f6   :  { %1550 = vtanh.f32 %v1153_v29 }
 0x5f7   :  { %1552 = vtanh.f32 %v1164_v38 }
 0x5fe   :  { %v1547_v4 = vpop.eup %1546 }
 0x5ff   :  { %v1549_v5 = vpop.eup %1548  ;;  %v1157_v6 = vmul.f32 0.5, %v1547_v4 }
 0x600   :  { %v1161_v19 = vmul.f32 0.5, %v1549_v5  ;;  %v1551_v7 = vpop.eup %1550 }
 0x601   :  { %v1158_v20 = vadd.f32 0.5, %v1157_v6  ;;  %v1553_v1 = vpop.eup %1552 }
 0x602   :  { %v1162_v8 = vadd.f32 0.5, %v1161_v19  ;;  %v1166_v23 = vmul.f32 0.5, %v1553_v1 }
 0x603   :  { %v1169_v10 = vmul.f32 %v1551_v7, %v1158_v20 }
 0x604   :  { %v1168_v21 = vmul.f32 %v1162_v8, %v2232_v25  ;;  %v1167_v2 = vadd.f32 0.5, %v1166_v23 }
 0x606   :  { %v2314_v22 = vadd.f32 %v1169_v10, %v1168_v21  ;;  %v2485_v10 = vld [vmem:[#allocation21_spill] sm:$0xff] }
 0x607   :  { %v218_v21 = vmul.f32 %v1938_v61, %v2485_v10  ;;  %v217_v1 = vmul.f32 %v1934_v53, %v2485_v10  ;;  %v219_v23 = vmul.f32 %v1951_v45, %v2485_v10 }
 0x608   :  { %1554 = vtanh.f32 %v2314_v22 }
 0x612   :  { %v1555_v24 = vpop.eup %1554 }
 0x613   :  { %v1172_v26 = vmul.f32 %v1555_v24, %v1167_v2  ;;  %v250_v24 = vadd.f32 %v218_v21, %v1961_v27 }
 0x615   :  { %v1173_v29 = vpack.c.bf16 %v1172_v26, %v1172_v26 }
 0x617   :  { %1207 = vmatmul.mubr.bf16.vlgmr.msra.gmra.mrb[24].mxu0 %v1173_v29  ;;  %1248 = vmatmul.mubr.bf16.vlgmr.msra.gmra.mrb[24].mxu1 %v1173_v29 }
 0x618   :  { %1280 = vmatpush1.bf16.msra.mxu0 %v2145_v12  ;;  %1321 = vmatpush1.bf16.msra.mxu1 %v2148_v13 }
 0x619   :  { %1281 = vmatprep.subr.bf16.mxu0 %v2151_v39  ;;  %1322 = vmatprep.subr.bf16.mxu1 %v2154_v14 }
 0x61a   :  { %1311 = vmatprep.mubr.bf16.mxu0 %v2455_v37  ;;  %1352 = vmatprep.mubr.bf16.mxu1 %v2455_v37  ;;  %v2480_v37 = vld [vmem:[#allocation18_spill] sm:$0xff] }
 0x61b   :  { %v214_v12 = vmul.f32 %v1938_v61, %v2480_v37  ;;  %v213_v13 = vmul.f32 %v1934_v53, %v2480_v37  ;;  %v215_v39 = vmul.f32 %v1951_v45, %v2480_v37  ;;  %v249_v37 = vadd.f32 %v217_v1, %v2470_v11 }
 0x61c   :  { %1282 = vmatpush1.bf16.msra.mxu0 %v2159_v15  ;;  %1323 = vmatpush1.bf16.msra.mxu1 %v2162_v16  ;;  %v2481_v15 = vld [vmem:[#allocation17_spill] sm:$0xff] }
 0x61d   :  { %1283 = vmatprep.subr.bf16.mxu0 %v2165_v17  ;;  %1324 = vmatprep.subr.bf16.mxu1 %v2168_v18  ;;  %v246_v14 = vadd.f32 %v214_v12, %v1961_v27  ;;  %v346_v16 = vmul.f32 %v2469_v9, %v2481_v15  ;;  %v245_v17 = vadd.f32 %v213_v13, %v2470_v11  ;;  %v2482_v18 = vld [vmem:[#allocation24_spill] sm:$0xff] }
 0x620   :  { %1284 = vmatpush1.bf16.msra.mxu0 %v2171_v33  ;;  %1325 = vmatpush1.bf16.msra.mxu1 %v2174_v40  ;;  %v345_v33 = vmul.f32 %v2482_v18, %v2481_v15  ;;  %v2483_v40 = vld [vmem:[#allocation27_spill] sm:$0xff] }
 0x621   :  { %1285 = vmatprep.subr.bf16.mxu0 %v2177_v56  ;;  %1326 = vmatprep.subr.bf16.mxu1 %v2180_v49  ;;  %v247_v56 = vadd.f32 %v215_v39, %v2483_v40  ;;  %v347_v49 = vmul.f32 %v1967_v42, %v2481_v15  ;;  %v251_v61 = vadd.f32 %v219_v23, %v2483_v40 }
 0x623   :  { %v379_v25 = vadd.f32 %v347_v49, %v247_v56 }
 0x624   :  { %1286 = vmatpush1.bf16.msra.mxu0 %v2183_v60  ;;  %1327 = vmatpush1.bf16.msra.mxu1 %v2186_v46  ;;  %v378_v60 = vadd.f32 %v346_v16, %v246_v14  ;;  %v2487_v14 = vld [vmem:[#allocation23_spill] sm:$0xff] }
 0x625   :  { %1287 = vmatprep.subr.bf16.mxu0 %v2189_v47  ;;  %1328 = vmatprep.subr.bf16.mxu1 %v2192_v0  ;;  %v377_v0 = vadd.f32 %v345_v33, %v245_v17 }
 0x628   :  { %1288 = vmatpush1.bf16.msra.mxu0 %v2253_v3  ;;  %1329 = vmatpush1.bf16.msra.mxu1 %v2256_v35  ;;  %v2484_v3 = vld [vmem:[#allocation22_spill] sm:$0xff] }
 0x629   :  { %1289 = vmatprep.subr.bf16.mxu0 %v2259_v54  ;;  %1330 = vmatprep.subr.bf16.mxu1 %v2262_v63 }
 0x62c   :  { %1290 = vmatpush1.bf16.msra.mxu0 %v2265_v48  ;;  %1331 = vmatpush1.bf16.msra.mxu1 %v2268_v59 }
 0x62d   :  { %1291 = vmatprep.subr.bf16.mxu0 %v2271_v55  ;;  %1332 = vmatprep.subr.bf16.mxu1 %v2274_v44 }
 0x630   :  { %1292 = vmatpush1.bf16.msra.mxu0 %v2277_v41  ;;  %1333 = vmatpush1.bf16.msra.mxu1 %v2280_v36 }
 0x631   :  { %1293 = vmatprep.subr.bf16.mxu0 %v2283_v57  ;;  %1334 = vmatprep.subr.bf16.mxu1 %v2286_v58 }
 0x634   :  { %1294 = vmatpush1.bf16.msra.mxu0 %v2289_v28  ;;  %1335 = vmatpush1.bf16.msra.mxu1 %v2292_v50 }
 0x6ea   :  { %v1208_v46 = vpop.f32.mrb[24].mxu0  ;;  %v1249_v47 = vpop.f32.mrb[24].mxu1 }
 0x6eb   :  { %v1256_v35 = vadd.f32 %v1208_v46, %v2484_v3  ;;  %v1258_v54 = vadd.f32 %v1249_v47, %v378_v60  ;;  %v1210_v63 = vpop.f32.mrb[25].mxu0  ;;  %v1251_v48 = vpop.f32.mrb[25].mxu1 }
 0x6ec   :  { %v1257_v59 = vadd.f32 %v1210_v63, %v377_v0  ;;  %v1259_v55 = vadd.f32 %v1251_v48, %v379_v25  ;;  %v1212_v44 = vpop.f32.mrb[26].mxu0  ;;  %v1253_v41 = vpop.f32.mrb[26].mxu1 }
 0x6ed   :  { %v1260_v36 = vmul.f32 0.5, %v1256_v35  ;;  %v1213_v57 = vpop.f32.mrb[27].mxu0  ;;  %v1254_v58 = vpop.f32.mrb[27].mxu1 }
 0x6ee   :  { %v1264_v28 = vmul.f32 0.5, %v1257_v59  ;;  %v1269_v50 = vmul.f32 0.5, %v1259_v55  ;;  %v1436_v57 = vld [vmem:[%s2394_s3] ss:$0 sm:$0xff] }
 0x6ef   :  { %1556 = vtanh.f32 %v1260_v36 }
 0x6f0   :  { %1558 = vtanh.f32 %v1264_v28 }
 0x6f1   :  { %1560 = vtanh.f32 %v1258_v54 }
 0x6f2   :  { %1562 = vtanh.f32 %v1269_v50  ;;  %v1437_v50 = vld [vmem:[%s2394_s3 + $0x1] ss:$0 sm:$0xff] }
 0x6f9   :  { %v1557_v30 = vpop.eup %1556 }
 0x6fa   :  { %v1559_v31 = vpop.eup %1558  ;;  %v1262_v32 = vmul.f32 0.5, %v1557_v30 }
 0x6fb   :  { %v1266_v34 = vmul.f32 0.5, %v1559_v31  ;;  %v1561_v62 = vpop.eup %1560 }
 0x6fc   :  { %v1263_v51 = vadd.f32 0.5, %v1262_v32  ;;  %v1563_v5 = vpop.eup %1562 }
 0x6fd   :  { %v1267_v43 = vadd.f32 0.5, %v1266_v34  ;;  %v1271_v6 = vmul.f32 0.5, %v1563_v5 }
 0x6fe   :  { %v1274_v52 = vmul.f32 %v1561_v62, %v1263_v51 }
 0x6ff   :  { %v1273_v38 = vmul.f32 %v1267_v43, %v2314_v22  ;;  %v1272_v19 = vadd.f32 0.5, %v1271_v6  ;;  %v2486_v22 = vld [vmem:[#allocation20_spill] sm:$0xff] }
 0x700   :  { %v350_v2 = vmul.f32 %v2469_v9, %v2486_v22  ;;  %v349_v26 = vmul.f32 %v2482_v18, %v2486_v22  ;;  %v351_v29 = vmul.f32 %v1967_v42, %v2486_v22 }
 0x701   :  { %v1275_v4 = vadd.f32 %v1274_v52, %v1273_v38 }
 0x702   :  { %v382_v12 = vadd.f32 %v350_v2, %v250_v24  ;;  %v381_v39 = vadd.f32 %v349_v26, %v249_v37  ;;  %v383_v45 = vadd.f32 %v351_v29, %v251_v61 }
 0x703   :  { %1564 = vtanh.f32 %v1275_v4 }
 0x70d   :  { %v1565_v20 = vpop.eup %1564 }
 0x70e   :  { %v1277_v7 = vmul.f32 %v1565_v20, %v1272_v19 }
 0x710   :  { %v1278_v8 = vpack.c.bf16 %v1277_v7, %v1277_v7 }
 0x712   :  { %1312 = vmatmul.mubr.bf16.vlgmr.msra.gmra.mrb[28].mxu0 %v1278_v8  ;;  %1353 = vmatmul.mubr.bf16.vlgmr.msra.gmra.mrb[28].mxu1 %v1278_v8 }
 0x7e5   :  { %v1313_v53 = vpop.f32.mrb[28].mxu0  ;;  %v1354_v13 = vpop.f32.mrb[28].mxu1 }
 0x7e6   :  { %v1361_v15 = vadd.f32 %v1313_v53, %v2487_v14  ;;  %v1363_v9 = vadd.f32 %v1354_v13, %v382_v12  ;;  %v1315_v16 = vpop.f32.mrb[29].mxu0  ;;  %v1356_v27 = vpop.f32.mrb[29].mxu1 }
 0x7e7   :  { %v1362_v17 = vadd.f32 %v1315_v16, %v381_v39  ;;  %v1364_v33 = vadd.f32 %v1356_v27, %v383_v45  ;;  %v1317_v18 = vpop.f32.mrb[30].mxu0  ;;  %v1358_v56 = vpop.f32.mrb[30].mxu1 }
 0x7e8   :  { %v1365_v49 = vmul.f32 0.5, %v1361_v15  ;;  %v1318_v42 = vpop.f32.mrb[31].mxu0  ;;  %v1359_v60 = vpop.f32.mrb[31].mxu1 }
 0x7e9   :  { %v1369_v11 = vmul.f32 0.5, %v1362_v17  ;;  %v1374_v40 = vmul.f32 0.5, %v1364_v33 }
 0x7ea   :  { %1566 = vtanh.f32 %v1365_v49 }
 0x7eb   :  { %1568 = vtanh.f32 %v1369_v11 }
 0x7ec   :  { %1570 = vtanh.f32 %v1363_v9 }
 0x7ed   :  { %1572 = vtanh.f32 %v1374_v40 }
 0x7f4   :  { %v1567_v46 = vpop.eup %1566 }
 0x7f5   :  { %v1569_v47 = vpop.eup %1568  ;;  %v1367_v0 = vmul.f32 0.5, %v1567_v46 }
 0x7f6   :  { %v1371_v25 = vmul.f32 0.5, %v1569_v47  ;;  %v1571_v35 = vpop.eup %1570 }
 0x7f7   :  { %v1368_v3 = vadd.f32 0.5, %v1367_v0  ;;  %v1573_v55 = vpop.eup %1572 }
 0x7f8   :  { %v1372_v54 = vadd.f32 0.5, %v1371_v25  ;;  %v1376_v44 = vmul.f32 0.5, %v1573_v55 }
 0x7f9   :  { %v1379_v63 = vmul.f32 %v1571_v35, %v1368_v3 }
 0x7fa   :  { %v1378_v48 = vmul.f32 %v1372_v54, %v1275_v4  ;;  %v1377_v41 = vadd.f32 0.5, %v1376_v44 }
 0x7fc   :  { %v1380_v59 = vadd.f32 %v1379_v63, %v1378_v48 }
 0x7fe   :  { %1574 = vtanh.f32 %v1380_v59 }
 0x808   :  { %v1575_v36 = vpop.eup %1574 }
 0x809   :  { %v1382_v58 = vmul.f32 %v1575_v36, %v1377_v41 }
 0x80b   :  { %v1388_v28 = vmul.f32 %v1436_v57, %v1382_v58 }
 0x80d   :  { %1389 = vadd.xlane.f32.xlu1 %v1388_v28 }
 0x89a   :  { %v1390_v30 = vpop.xlane.xlu1 %1389 }
 0x89b   :  { %v1396_v31 = vadd.f32 %v1437_v50, %v1390_v30 }
 0x89d   :  { %1398 = vst.msk [vmem:[%s2395_s4] sm:$0xff] %vm1397_vm0, %v1396_v31 }
 0x89e   :  { %1403 = vsyncpa [#allocation3], 1 }

</bundles_post_ra>
